<compile_context>
chip_gen: v7x
topology: tpu7x:2x2x1
jax: 0.10.0
libtpu: 0.0.40
codegen_flags: <defaults>
</compile_context>

<pallas_src>
import jax
import jax.numpy as jnp
from jax.experimental import pallas as pl
from jax.experimental.pallas import tpu as pltpu

# ---- model dimensions (small, consistent with the module's forward) ----
HID_DIM = 32      # hid_dim
EMB_DIM = 16      # emb_dim
OUT_DIM = 64      # out_dim (vocab)
KEY_DIM = 32      # key_dim == val_dim (V = annotations)
N_KEYS  = 8       # number of annotation vectors
BATCH   = 2

LANE = 128        # working lane width; every hidden-sized block sits on a 128-lane boundary


def _decoder_kernel(tok_ref, ann_ref, h0_ref, o0_ref, wg_ref, w32_ref, b_ref,
                    out_ref, h_scr, o_scr, kp_scr):
    f32, bf16 = jnp.float32, jnp.bfloat16
    H, L, V = HID_DIM, LANE, OUT_DIM
    Bp, N, K = ann_ref.shape
    t = pl.program_id(0)

    @pl.when(t == 0)
    def _init():
        h_scr[...] = h0_ref[...]
        o_scr[...] = o0_ref[...]
        # Attention key projection depends only on the annotations -> compute once,
        # keep it VMEM-resident for the whole decode.
        ann_flat = ann_ref[...].reshape(-1, K)
        kp = (jnp.dot(ann_flat.astype(bf16), w32_ref[:, 2 * L:2 * L + H],
                      preferred_element_type=f32)
              + b_ref[1:2, 2 * L:2 * L + H])
        kp_scr[...] = kp.reshape(Bp, N, H)

    h_prev = h_scr[...]                                   # [Bp, 128], pad lanes stay 0
    o_prev = o_scr[...]

    # ---- fused GRU pre-activations: ONE dot over cat(onehot(tok), o_prev, h_prev).
    #      Gate columns: r (gi+gh pre-summed) | z (pre-summed) | gi_n | gh_n.
    #      Embedding table is folded into the token rows of wg_ref.
    tok = tok_ref[...]                                    # [Bp, 1] int32
    onehot = (jax.lax.broadcasted_iota(jnp.int32, (Bp, L), 1) == tok).astype(f32)
    x = jnp.concatenate([onehot, o_prev, h_prev], axis=-1).astype(bf16)   # [Bp, 384]
    g = (jnp.dot(x, wg_ref[...], preferred_element_type=f32)
         + b_ref[0:1, 0:4 * L])                           # [Bp, 512]
    r = jax.nn.sigmoid(g[:, 0:L])
    z = jax.nn.sigmoid(g[:, L:2 * L])
    n = jnp.tanh(g[:, 2 * L:3 * L] + r * g[:, 3 * L:4 * L])
    h_t = (1.0 - z) * n + z * h_prev                      # [Bp, 128]; pad lanes stay 0

    # ---- fused h_t projections: attention query | combine-h (+bc) ----
    hproj = (jnp.dot(h_t[:, :H].astype(bf16), w32_ref[:, 0:2 * L],
                     preferred_element_type=f32)
             + b_ref[1:2, 0:2 * L])                       # [Bp, 256]
    q = hproj[:, 0:H]                                     # [Bp, 32]
    comb_h = hproj[:, L:2 * L]                            # [Bp, 128]; bc folded in, pad lanes 0

    # ---- additive (Bahdanau) attention; scalar bias ba dropped (cancels in softmax) ----
    e = jnp.tanh(kp_scr[...] + q[:, None, :])             # [Bp, N, H]
    scores = jnp.sum(e * b_ref[2:3, 0:H], axis=-1)        # [Bp, N]
    m = jnp.max(scores, axis=-1, keepdims=True)
    pexp = jnp.exp(scores - m)
    a_t = pexp * pl.reciprocal(jnp.sum(pexp, axis=-1, keepdims=True), approx=True)
    c_t = jnp.sum(a_t[:, :, None] * ann_ref[...], axis=1)  # [Bp, K]

    # ---- attn_combine(cat(h_t, c_t)) + ReLU ----
    o_t = jnp.maximum(
        comb_h + jnp.dot(c_t.astype(bf16), w32_ref[:, 3 * L:4 * L],
                         preferred_element_type=f32),
        0.0)                                               # [Bp, 128]; pad lanes stay 0

    # ---- output projection + log_softmax (padded vocab lanes carry -1e30 bias) ----
    logit = (jnp.dot(o_t[:, :H].astype(bf16), w32_ref[:, 4 * L:5 * L],
                     preferred_element_type=f32)
             + b_ref[1:2, 4 * L:5 * L])                    # [Bp, 128]
    mx = jnp.max(logit, axis=-1, keepdims=True)
    logp = logit - (mx + jnp.log(jnp.sum(jnp.exp(logit - mx), axis=-1, keepdims=True)))

    # ---- persist recurrent state; emit one lane-dense per-step output slab ----
    h_scr[...] = h_t
    o_scr[...] = o_t
    out_ref[:, 0:L] = logp
    out_ref[:, L:2 * L] = h_t
    out_ref[:, 2 * L:3 * L] = o_t
    out_ref[:, 3 * L:3 * L + N] = a_t


def init_params(key):
    ks = jax.random.split(key, 16)
    s = 0.1
    f32 = jnp.float32
    p = {}
    p["embedding"] = jax.random.normal(ks[0], (OUT_DIM, EMB_DIM), f32) * s
    # GRU: W_ih [3H, EMB+H] split into EMB / H parts (stored pre-transposed)
    p["w_ih_emb_t"] = jax.random.normal(ks[1], (EMB_DIM, 3 * HID_DIM), f32) * s
    p["w_ih_hid_t"] = jax.random.normal(ks[2], (HID_DIM, 3 * HID_DIM), f32) * s
    p["w_hh_t"]     = jax.random.normal(ks[3], (HID_DIM, 3 * HID_DIM), f32) * s
    p["b_ih"] = jax.random.normal(ks[4], (1, 3 * HID_DIM), f32) * s
    p["b_hh"] = jax.random.normal(ks[5], (1, 3 * HID_DIM), f32) * s
    # additive attention
    p["wk_t"] = jax.random.normal(ks[6], (KEY_DIM, HID_DIM), f32) * s
    p["bk"]   = jax.random.normal(ks[7], (1, HID_DIM), f32) * s
    p["wq_t"] = jax.random.normal(ks[8], (HID_DIM, HID_DIM), f32) * s
    p["bq"]   = jax.random.normal(ks[9], (1, HID_DIM), f32) * s
    p["va"]   = jax.random.normal(ks[10], (1, HID_DIM), f32) * s
    p["ba"]   = jax.random.normal(ks[11], (1, 1), f32) * s   # cancels in softmax -> not packed
    # attn_combine: Linear(H + VAL, H) split into H / VAL parts
    p["wc_h_t"] = jax.random.normal(ks[12], (HID_DIM, HID_DIM), f32) * s
    p["wc_c_t"] = jax.random.normal(ks[13], (KEY_DIM, HID_DIM), f32) * s
    p["bc"]     = jnp.zeros((1, HID_DIM), f32)
    # out: Linear(H, OUT_DIM)
    p["wo_t"] = jax.random.normal(ks[14], (HID_DIM, OUT_DIM), f32) * s
    p["bo"]   = jax.random.normal(ks[15], (1, OUT_DIM), f32) * s
    return p


def pack_params(p):
    """Pack into:
      w_gru  [384, 512] bf16  -- rows: onehot(token) | o_prev | h_prev (128-lane blocks);
                                 cols: r (ih+hh summed) | z (summed) | gi_n | gh_n.
                                 Embedding table folded into the token rows.
      w32    [32, 640]  bf16  -- Wq | Wc_h | Wk | Wc_c | Wo, one 128-lane block each.
      b_slab [8, 640]   f32   -- row0 gate biases; row1 bq|bc|bk|bo(+-1e30 vocab pad); row2 va.
    """
    assert KEY_DIM == HID_DIM, "packed 32-row slab assumes key_dim == val_dim == hid_dim"
    f32, bf16 = jnp.float32, jnp.bfloat16
    H, L, V = HID_DIM, LANE, OUT_DIM

    e_gates = p["embedding"] @ p["w_ih_emb_t"]        # [V, 3H] (embedding folded in)
    w_ihh   = p["w_ih_hid_t"]                         # [H, 3H] (prev_o part of W_ih)
    w_hh    = p["w_hh_t"]                             # [H, 3H]

    w_gru = jnp.zeros((3 * L, 4 * L), f32)
    for g, c0 in ((0, 0), (1, L)):                    # r, z: ih and hh columns aligned
        w_gru = w_gru.at[0:V,             c0:c0 + H].set(e_gates[:, g * H:(g + 1) * H])
        w_gru = w_gru.at[L:L + H,         c0:c0 + H].set(w_ihh[:, g * H:(g + 1) * H])
        w_gru = w_gru.at[2 * L:2 * L + H, c0:c0 + H].set(w_hh[:, g * H:(g + 1) * H])
    # n gate: gi_n (lanes 256:288) and gh_n (lanes 384:416) kept separate (need r*gh_n)
    w_gru = w_gru.at[0:V,             2 * L:2 * L + H].set(e_gates[:, 2 * H:3 * H])
    w_gru = w_gru.at[L:L + H,         2 * L:2 * L + H].set(w_ihh[:, 2 * H:3 * H])
    w_gru = w_gru.at[2 * L:2 * L + H, 3 * L:3 * L + H].set(w_hh[:, 2 * H:3 * H])

    w32 = jnp.zeros((H, 5 * L), f32)
    w32 = w32.at[:, 0:H].set(p["wq_t"])               # attention query
    w32 = w32.at[:, L:L + H].set(p["wc_h_t"])         # combine, h part
    w32 = w32.at[:, 2 * L:2 * L + H].set(p["wk_t"])   # attention key proj
    w32 = w32.at[:, 3 * L:3 * L + H].set(p["wc_c_t"]) # combine, context part
    w32 = w32.at[:, 4 * L:4 * L + V].set(p["wo_t"])   # output projection

    b = jnp.zeros((8, 5 * L), f32)
    b = b.at[0, 0:H].set(p["b_ih"][0, 0:H] + p["b_hh"][0, 0:H])                  # r
    b = b.at[0, L:L + H].set(p["b_ih"][0, H:2 * H] + p["b_hh"][0, H:2 * H])      # z
    b = b.at[0, 2 * L:2 * L + H].set(p["b_ih"][0, 2 * H:3 * H])                  # gi_n
    b = b.at[0, 3 * L:3 * L + H].set(p["b_hh"][0, 2 * H:3 * H])                  # gh_n
    b = b.at[1, 0:H].set(p["bq"][0])
    b = b.at[1, L:L + H].set(p["bc"][0])
    b = b.at[1, 2 * L:2 * L + H].set(p["bk"][0])
    b = b.at[1, 4 * L:4 * L + V].set(p["bo"][0])
    b = b.at[1, 4 * L + V:5 * L].set(-1e30)           # padded vocab classes -> -inf logits
    b = b.at[2, 0:H].set(p["va"][0])                  # ba dropped: cancels in softmax

    return {"w_gru": w_gru.astype(bf16), "w32": w32.astype(bf16), "b_slab": b}


def attention_decoder_decode(params, tokens, hidden, annotations):
    """Fused multi-step decode (time loop inside the kernel).
    tokens: [T, B, 1] int32; hidden: (h0, o0) each [1, B, H]; annotations: [B, N, K].
    Returns (logits [T, B, OUT], (h_T [1, B, H], o_T [1, B, H]), a [T, B, N])."""
    prev_h, prev_o = hidden
    T, B = tokens.shape[0], tokens.shape[1]
    n_keys, key_dim = annotations.shape[1], annotations.shape[2]
    b_pad = max(8, ((B + 7) // 8) * 8)                # fill f32 sublanes

    tok_p = jnp.zeros((T, b_pad, 1), jnp.int32).at[:, :B, :].set(tokens)
    ann_p = jnp.zeros((b_pad, n_keys, key_dim), jnp.float32).at[:B].set(annotations)
    h0 = jnp.zeros((b_pad, LANE), jnp.float32).at[:B, :HID_DIM].set(prev_h[0])
    o0 = jnp.zeros((b_pad, LANE), jnp.float32).at[:B, :HID_DIM].set(prev_o[0])

    const = lambda t: (0, 0)
    grid_spec = pltpu.PrefetchScalarGridSpec(
        num_scalar_prefetch=0,
        grid=(T,),
        in_specs=[
            pl.BlockSpec((None, b_pad, 1), lambda t: (t, 0, 0)),            # per-step token ids
            pl.BlockSpec((b_pad, n_keys, key_dim), lambda t: (0, 0, 0)),    # annotations (resident)
            pl.BlockSpec((b_pad, LANE), const),                             # h0
            pl.BlockSpec((b_pad, LANE), const),                             # o0
            pl.BlockSpec((3 * LANE, 4 * LANE), const),                      # fused GRU weights
            pl.BlockSpec((HID_DIM, 5 * LANE), const),                       # Wq|Wc_h|Wk|Wc_c|Wo
            pl.BlockSpec((8, 5 * LANE), const),                             # bias slab
        ],
        out_specs=pl.BlockSpec((None, b_pad, 4 * LANE), lambda t: (t, 0, 0)),
        scratch_shapes=[
            pltpu.VMEM((b_pad, LANE), jnp.float32),                         # h state
            pltpu.VMEM((b_pad, LANE), jnp.float32),                         # o state
            pltpu.VMEM((b_pad, n_keys, HID_DIM), jnp.float32),              # cached key proj
        ],
    )
    out = pl.pallas_call(
        _decoder_kernel,
        out_shape=jax.ShapeDtypeStruct((T, b_pad, 4 * LANE), jnp.float32),
        grid_spec=grid_spec,
        compiler_params=pltpu.CompilerParams(dimension_semantics=("arbitrary",)),
    )(tok_p, ann_p, h0, o0, params["w_gru"], params["w32"], params["b_slab"])

    logits = out[:, :B, :OUT_DIM]                                # [T, B, OUT]
    h_T = out[T - 1, :B, LANE:LANE + HID_DIM]                    # [B, H]
    o_T = out[T - 1, :B, 2 * LANE:2 * LANE + HID_DIM]            # [B, H]
    a = out[:, :B, 3 * LANE:3 * LANE + n_keys]                   # [T, B, N]
    return logits, (h_T[None], o_T[None]), a


def attention_decoder_forward(params, input_tokens, hidden, annotations):
    """Single decoder step, same signature/shapes as the PyTorch module's forward:
    input_tokens [1, B, 1]; hidden (h, o) each [1, B, H]; annotations [B, N, K].
    Returns (logits [1, B, OUT], (h_t [1, B, H], o_t [1, B, H]), a_t [B, N])."""
    logits, (h_t, o_t), a = attention_decoder_decode(params, input_tokens, hidden, annotations)
    return logits, (h_t, o_t), a[0]


if __name__ == "__main__":
    key = jax.random.PRNGKey(0)
    pkey, ikey, akey = jax.random.split(key, 3)
    params = pack_params(init_params(pkey))

    annotations = jax.random.normal(akey, (BATCH, N_KEYS, KEY_DIM), jnp.float32)
    h0 = jnp.zeros((1, BATCH, HID_DIM), jnp.float32)   # initHidden
    o0 = jnp.zeros((1, BATCH, HID_DIM), jnp.float32)

    # single step (exactly the module's forward)
    input_tokens = jax.random.randint(ikey, (1, BATCH, 1), 0, OUT_DIM, dtype=jnp.int32)
    fwd = jax.jit(attention_decoder_forward)
    logits, (h_t, o_t), a_t = fwd(params, input_tokens, (h0, o0), annotations)
    jax.block_until_ready((logits, h_t, o_t, a_t))

    # fused multi-step decode (time loop inside the kernel, weights VMEM-resident)
    T = 8
    tokens = jax.random.randint(ikey, (T, BATCH, 1), 0, OUT_DIM, dtype=jnp.int32)
    dec = jax.jit(attention_decoder_decode)
    logits_seq, (h_T, o_T), a_seq = dec(params, tokens, (h0, o0), annotations)
    jax.block_until_ready((logits_seq, h_T, o_T, a_seq))

    print("KERNEL_OK")
</pallas_src>

<mosaic_0001>
module attributes {stable_mosaic.version = 11 : i64} {
  func.func @_decoder_kernel(%arg0: i32, %arg1: memref<1x8x1xi32, #tpu.memory_space<vmem>>, %arg2: memref<8x8x32xf32, #tpu.memory_space<vmem>>, %arg3: memref<8x128xf32, #tpu.memory_space<vmem>>, %arg4: memref<8x128xf32, #tpu.memory_space<vmem>>, %arg5: memref<384x512xbf16, #tpu.memory_space<vmem>>, %arg6: memref<32x640xbf16, #tpu.memory_space<vmem>>, %arg7: memref<8x640xf32, #tpu.memory_space<vmem>>, %arg8: memref<1x8x512xf32, #tpu.memory_space<vmem>>, %arg9: memref<8x128xf32, #tpu.memory_space<vmem>>, %arg10: memref<8x128xf32, #tpu.memory_space<vmem>>, %arg11: memref<8x8x32xf32, #tpu.memory_space<vmem>>) attributes {dimension_semantics = [#tpu.dimension_semantics<arbitrary>], iteration_bounds = array<i64: 1>, scalar_prefetch = 0 : i64, scratch_operands = 3 : i64, tpu.core_type = #tpu.core_type<tc>, window_params = [{transform_indices = @transform_0, window_bounds = array<i64: 1, 8, 1>}, {pipeline_mode = #tpu.pipeline_mode<synchronous>, transform_indices = @transform_1, window_bounds = array<i64: 8, 8, 32>}, {pipeline_mode = #tpu.pipeline_mode<synchronous>, transform_indices = @transform_2, window_bounds = array<i64: 8, 128>}, {pipeline_mode = #tpu.pipeline_mode<synchronous>, transform_indices = @transform_3, window_bounds = array<i64: 8, 128>}, {pipeline_mode = #tpu.pipeline_mode<synchronous>, transform_indices = @transform_4, window_bounds = array<i64: 384, 512>}, {pipeline_mode = #tpu.pipeline_mode<synchronous>, transform_indices = @transform_5, window_bounds = array<i64: 32, 640>}, {pipeline_mode = #tpu.pipeline_mode<synchronous>, transform_indices = @transform_6, window_bounds = array<i64: 8, 640>}, {transform_indices = @transform_7, window_bounds = array<i64: 1, 8, 512>}]} {
    %c0_i32 = arith.constant 0 : i32
    %0 = arith.cmpi eq, %arg0, %c0_i32 : i32
    %1 = arith.extui %0 : i1 to i32
    %c0_i32_0 = arith.constant 0 : i32
    %2 = arith.cmpi ne, %1, %c0_i32_0 : i32
    scf.if %2 {
      %c0_52 = arith.constant 0 : index
      %c0_53 = arith.constant 0 : index
      %113 = vector.load %arg3[%c0_52, %c0_53] : memref<8x128xf32, #tpu.memory_space<vmem>>, vector<8x128xf32>
      %c0_54 = arith.constant 0 : index
      %c0_55 = arith.constant 0 : index
      %114 = vector.load %arg9[%c0_54, %c0_55] : memref<8x128xf32, #tpu.memory_space<vmem>>, vector<8x128xf32>
      tpu.vector_store %arg9[%c0_54, %c0_55], %113 {strides = array<i32>} : memref<8x128xf32, #tpu.memory_space<vmem>>, vector<8x128xf32>,
      %c0_56 = arith.constant 0 : index
      %c0_57 = arith.constant 0 : index
      %115 = vector.load %arg4[%c0_56, %c0_57] : memref<8x128xf32, #tpu.memory_space<vmem>>, vector<8x128xf32>
      %c0_58 = arith.constant 0 : index
      %c0_59 = arith.constant 0 : index
      %116 = vector.load %arg10[%c0_58, %c0_59] : memref<8x128xf32, #tpu.memory_space<vmem>>, vector<8x128xf32>
      tpu.vector_store %arg10[%c0_58, %c0_59], %115 {strides = array<i32>} : memref<8x128xf32, #tpu.memory_space<vmem>>, vector<8x128xf32>,
      %c0_60 = arith.constant 0 : index
      %c0_61 = arith.constant 0 : index
      %c0_62 = arith.constant 0 : index
      %117 = vector.load %arg2[%c0_60, %c0_61, %c0_62] : memref<8x8x32xf32, #tpu.memory_space<vmem>>, vector<8x8x32xf32>
      %118 = vector.shape_cast %117 : vector<8x8x32xf32> to vector<64x32xf32>
      %119 = arith.truncf %118 : vector<64x32xf32> to vector<64x32xbf16>
      %c0_63 = arith.constant 0 : index
      %c256_64 = arith.constant 256 : index
      %120 = vector.load %arg6[%c0_63, %c256_64] : memref<32x640xbf16, #tpu.memory_space<vmem>>, vector<32x32xbf16>
      %cst_65 = arith.constant dense<0.000000e+00> : vector<64x32xf32>
      %121 = tpu.matmul %119, %120, %cst_65 {dimension_numbers = #tpu.dot_dimension_numbers<[1], [0], [0], [1], [0, 0, 1, 1], [], []>} : vector<64x32xbf16>, vector<32x32xbf16>, vector<64x32xf32> -> vector<64x32xf32>
      %c1_66 = arith.constant 1 : index
      %c256_67 = arith.constant 256 : index
      %122 = vector.load %arg7[%c1_66, %c256_67] : memref<8x640xf32, #tpu.memory_space<vmem>>, vector<1x32xf32>
      %123 = vector.broadcast %122 : vector<1x32xf32> to vector<64x32xf32>
      %124 = arith.addf %121, %123 : vector<64x32xf32>
      %125 = vector.shape_cast %124 : vector<64x32xf32> to vector<8x8x32xf32>
      %c0_68 = arith.constant 0 : index
      %c0_69 = arith.constant 0 : index
      %c0_70 = arith.constant 0 : index
      %126 = vector.load %arg11[%c0_68, %c0_69, %c0_70] : memref<8x8x32xf32, #tpu.memory_space<vmem>>, vector<8x8x32xf32>
      tpu.vector_store %arg11[%c0_68, %c0_69, %c0_70], %125 {strides = array<i32>} : memref<8x8x32xf32, #tpu.memory_space<vmem>>, vector<8x8x32xf32>,
    } else {
    }
    %c0 = arith.constant 0 : index
    %c0_1 = arith.constant 0 : index
    %3 = vector.load %arg9[%c0, %c0_1] : memref<8x128xf32, #tpu.memory_space<vmem>>, vector<8x128xf32>
    %c0_2 = arith.constant 0 : index
    %c0_3 = arith.constant 0 : index
    %4 = vector.load %arg10[%c0_2, %c0_3] : memref<8x128xf32, #tpu.memory_space<vmem>>, vector<8x128xf32>
    %c0_4 = arith.constant 0 : index
    %c0_5 = arith.constant 0 : index
    %c0_6 = arith.constant 0 : index
    %5 = vector.load %arg1[%c0_4, %c0_5, %c0_6] : memref<1x8x1xi32, #tpu.memory_space<vmem>>, vector<1x8x1xi32>
    %6 = vector.shape_cast %5 : vector<1x8x1xi32> to vector<8x1xi32>
    %7 = tpu.iota {dimensions = array<i32: 1>} : vector<8x128xi32>
    %8 = vector.broadcast %6 : vector<8x1xi32> to vector<8x128xi32>
    %9 = arith.cmpi eq, %7, %8 : vector<8x128xi32>
    %10 = arith.extui %9 : vector<8x128xi1> to vector<8x128xi32>
    %11 = arith.sitofp %10 : vector<8x128xi32> to vector<8x128xf32>
    %12 = tpu.concatenate %11, %4, %3 in 1 : vector<8x128xf32>, vector<8x128xf32>, vector<8x128xf32> -> vector<8x384xf32>
    %13 = arith.truncf %12 : vector<8x384xf32> to vector<8x384xbf16>
    %c0_7 = arith.constant 0 : index
    %c0_8 = arith.constant 0 : index
    %14 = vector.load %arg5[%c0_7, %c0_8] : memref<384x512xbf16, #tpu.memory_space<vmem>>, vector<384x512xbf16>
    %cst = arith.constant dense<0.000000e+00> : vector<8x512xf32>
    %15 = tpu.matmul %13, %14, %cst {dimension_numbers = #tpu.dot_dimension_numbers<[1], [0], [0], [1], [0, 0, 1, 1], [], []>} : vector<8x384xbf16>, vector<384x512xbf16>, vector<8x512xf32> -> vector<8x512xf32>
    %c0_9 = arith.constant 0 : index
    %c0_10 = arith.constant 0 : index
    %16 = vector.load %arg7[%c0_9, %c0_10] : memref<8x640xf32, #tpu.memory_space<vmem>>, vector<1x512xf32>
    %17 = vector.broadcast %16 : vector<1x512xf32> to vector<8x512xf32>
    %18 = arith.addf %15, %17 : vector<8x512xf32>
    %19 = vector.extract_strided_slice %18 {offsets = [0, 0], sizes = [8, 128], strides = [1, 1]} : vector<8x512xf32> to vector<8x128xf32>
    %20 = arith.negf %19 : vector<8x128xf32>
    %21 = math.exp %20 : vector<8x128xf32>
    %cst_11 = arith.constant 1.000000e+00 : f32
    %22 = vector.broadcast %cst_11 : f32 to vector<8x128xf32>
    %23 = arith.addf %22, %21 : vector<8x128xf32>
    %24 = arith.divf %22, %23 : vector<8x128xf32>
    %25 = vector.extract_strided_slice %18 {offsets = [0, 128], sizes = [8, 128], strides = [1, 1]} : vector<8x512xf32> to vector<8x128xf32>
    %26 = arith.negf %25 : vector<8x128xf32>
    %27 = math.exp %26 : vector<8x128xf32>
    %cst_12 = arith.constant 1.000000e+00 : f32
    %28 = vector.broadcast %cst_12 : f32 to vector<8x128xf32>
    %29 = arith.addf %28, %27 : vector<8x128xf32>
    %30 = arith.divf %28, %29 : vector<8x128xf32>
    %31 = vector.extract_strided_slice %18 {offsets = [0, 256], sizes = [8, 128], strides = [1, 1]} : vector<8x512xf32> to vector<8x128xf32>
    %32 = vector.extract_strided_slice %18 {offsets = [0, 384], sizes = [8, 128], strides = [1, 1]} : vector<8x512xf32> to vector<8x128xf32>
    %33 = arith.mulf %24, %32 : vector<8x128xf32>
    %34 = arith.addf %31, %33 : vector<8x128xf32>
    %35 = math.tanh %34 : vector<8x128xf32>
    %cst_13 = arith.constant 1.000000e+00 : f32
    %36 = vector.broadcast %cst_13 : f32 to vector<8x128xf32>
    %37 = arith.subf %36, %30 : vector<8x128xf32>
    %38 = arith.mulf %37, %35 : vector<8x128xf32>
    %39 = arith.mulf %30, %3 : vector<8x128xf32>
    %40 = arith.addf %38, %39 : vector<8x128xf32>
    %41 = vector.extract_strided_slice %40 {offsets = [0, 0], sizes = [8, 32], strides = [1, 1]} : vector<8x128xf32> to vector<8x32xf32>
    %42 = arith.truncf %41 : vector<8x32xf32> to vector<8x32xbf16>
    %c0_14 = arith.constant 0 : index
    %c0_15 = arith.constant 0 : index
    %43 = vector.load %arg6[%c0_14, %c0_15] : memref<32x640xbf16, #tpu.memory_space<vmem>>, vector<32x256xbf16>
    %cst_16 = arith.constant dense<0.000000e+00> : vector<8x256xf32>
    %44 = tpu.matmul %42, %43, %cst_16 {dimension_numbers = #tpu.dot_dimension_numbers<[1], [0], [0], [1], [0, 0, 1, 1], [], []>} : vector<8x32xbf16>, vector<32x256xbf16>, vector<8x256xf32> -> vector<8x256xf32>
    %c1 = arith.constant 1 : index
    %c0_17 = arith.constant 0 : index
    %45 = vector.load %arg7[%c1, %c0_17] : memref<8x640xf32, #tpu.memory_space<vmem>>, vector<1x256xf32>
    %46 = vector.broadcast %45 : vector<1x256xf32> to vector<8x256xf32>
    %47 = arith.addf %44, %46 : vector<8x256xf32>
    %48 = vector.extract_strided_slice %47 {offsets = [0, 0], sizes = [8, 32], strides = [1, 1]} : vector<8x256xf32> to vector<8x32xf32>
    %49 = vector.extract_strided_slice %47 {offsets = [0, 128], sizes = [8, 128], strides = [1, 1]} : vector<8x256xf32> to vector<8x128xf32>
    %c0_18 = arith.constant 0 : index
    %c0_19 = arith.constant 0 : index
    %c0_20 = arith.constant 0 : index
    %50 = vector.load %arg11[%c0_18, %c0_19, %c0_20] : memref<8x8x32xf32, #tpu.memory_space<vmem>>, vector<8x8x32xf32>
    %51 = vector.shape_cast %48 : vector<8x32xf32> to vector<8x1x32xf32>
    %52 = vector.broadcast %51 : vector<8x1x32xf32> to vector<8x8x32xf32>
    %53 = arith.addf %50, %52 : vector<8x8x32xf32>
    %54 = math.tanh %53 : vector<8x8x32xf32>
    %c2 = arith.constant 2 : index
    %c0_21 = arith.constant 0 : index
    %55 = vector.load %arg7[%c2, %c0_21] : memref<8x640xf32, #tpu.memory_space<vmem>>, vector<1x32xf32>
    %56 = vector.shape_cast %55 : vector<1x32xf32> to vector<1x1x32xf32>
    %57 = vector.broadcast %56 : vector<1x1x32xf32> to vector<8x8x32xf32>
    %58 = arith.mulf %54, %57 : vector<8x8x32xf32>
    %cst_22 = arith.constant dense<0.000000e+00> : vector<8x8xf32>
    %59 = vector.multi_reduction <add>, %58, %cst_22 [2] : vector<8x8x32xf32> to vector<8x8xf32>
    %cst_23 = arith.constant dense<0xFF800000> : vector<8xf32>
    %60 = vector.multi_reduction <maximumf>, %59, %cst_23 [1] : vector<8x8xf32> to vector<8xf32>
    %61 = vector.shape_cast %60 : vector<8xf32> to vector<8x1xf32>
    %62 = vector.broadcast %61 : vector<8x1xf32> to vector<8x8xf32>
    %63 = arith.subf %59, %62 : vector<8x8xf32>
    %64 = math.exp %63 : vector<8x8xf32>
    %cst_24 = arith.constant dense<0.000000e+00> : vector<8xf32>
    %65 = vector.multi_reduction <add>, %64, %cst_24 [1] : vector<8x8xf32> to vector<8xf32>
    %66 = vector.shape_cast %65 : vector<8xf32> to vector<8x1xf32>
    %67 = tpu.reciprocal %66 {approx = true} : vector<8x1xf32> -> vector<8x1xf32>
    %68 = vector.broadcast %67 : vector<8x1xf32> to vector<8x8xf32>
    %69 = arith.mulf %64, %68 : vector<8x8xf32>
    %70 = vector.shape_cast %69 : vector<8x8xf32> to vector<8x8x1xf32>
    %c0_25 = arith.constant 0 : index
    %c0_26 = arith.constant 0 : index
    %c0_27 = arith.constant 0 : index
    %71 = vector.load %arg2[%c0_25, %c0_26, %c0_27] : memref<8x8x32xf32, #tpu.memory_space<vmem>>, vector<8x8x32xf32>
    %72 = vector.broadcast %70 : vector<8x8x1xf32> to vector<8x8x32xf32>
    %73 = arith.mulf %72, %71 : vector<8x8x32xf32>
    %cst_28 = arith.constant dense<0.000000e+00> : vector<8x32xf32>
    %74 = vector.multi_reduction <add>, %73, %cst_28 [1] : vector<8x8x32xf32> to vector<8x32xf32>
    %75 = arith.truncf %74 : vector<8x32xf32> to vector<8x32xbf16>
    %c0_29 = arith.constant 0 : index
    %c384 = arith.constant 384 : index
    %76 = vector.load %arg6[%c0_29, %c384] : memref<32x640xbf16, #tpu.memory_space<vmem>>, vector<32x128xbf16>
    %cst_30 = arith.constant dense<0.000000e+00> : vector<8x128xf32>
    %77 = tpu.matmul %75, %76, %cst_30 {dimension_numbers = #tpu.dot_dimension_numbers<[1], [0], [0], [1], [0, 0, 1, 1], [], []>} : vector<8x32xbf16>, vector<32x128xbf16>, vector<8x128xf32> -> vector<8x128xf32>
    %78 = arith.addf %49, %77 : vector<8x128xf32>
    %cst_31 = arith.constant 0.000000e+00 : f32
    %79 = vector.broadcast %cst_31 : f32 to vector<8x128xf32>
    %80 = arith.maximumf %78, %79 : vector<8x128xf32>
    %81 = vector.extract_strided_slice %80 {offsets = [0, 0], sizes = [8, 32], strides = [1, 1]} : vector<8x128xf32> to vector<8x32xf32>
    %82 = arith.truncf %81 : vector<8x32xf32> to vector<8x32xbf16>
    %c0_32 = arith.constant 0 : index
    %c512 = arith.constant 512 : index
    %83 = vector.load %arg6[%c0_32, %c512] : memref<32x640xbf16, #tpu.memory_space<vmem>>, vector<32x128xbf16>
    %cst_33 = arith.constant dense<0.000000e+00> : vector<8x128xf32>
    %84 = tpu.matmul %82, %83, %cst_33 {dimension_numbers = #tpu.dot_dimension_numbers<[1], [0], [0], [1], [0, 0, 1, 1], [], []>} : vector<8x32xbf16>, vector<32x128xbf16>, vector<8x128xf32> -> vector<8x128xf32>
    %c1_34 = arith.constant 1 : index
    %c512_35 = arith.constant 512 : index
    %85 = vector.load %arg7[%c1_34, %c512_35] : memref<8x640xf32, #tpu.memory_space<vmem>>, vector<1x128xf32>
    %86 = vector.broadcast %85 : vector<1x128xf32> to vector<8x128xf32>
    %87 = arith.addf %84, %86 : vector<8x128xf32>
    %cst_36 = arith.constant dense<0xFF800000> : vector<8xf32>
    %88 = vector.multi_reduction <maximumf>, %87, %cst_36 [1] : vector<8x128xf32> to vector<8xf32>
    %89 = vector.shape_cast %88 : vector<8xf32> to vector<8x1xf32>
    %90 = vector.broadcast %89 : vector<8x1xf32> to vector<8x128xf32>
    %91 = arith.subf %87, %90 : vector<8x128xf32>
    %92 = math.exp %91 : vector<8x128xf32>
    %cst_37 = arith.constant dense<0.000000e+00> : vector<8xf32>
    %93 = vector.multi_reduction <add>, %92, %cst_37 [1] : vector<8x128xf32> to vector<8xf32>
    %94 = vector.shape_cast %93 : vector<8xf32> to vector<8x1xf32>
    %95 = math.log %94 : vector<8x1xf32>
    %96 = arith.addf %89, %95 : vector<8x1xf32>
    %97 = vector.broadcast %96 : vector<8x1xf32> to vector<8x128xf32>
    %98 = arith.subf %87, %97 : vector<8x128xf32>
    %c0_38 = arith.constant 0 : index
    %c0_39 = arith.constant 0 : index
    %99 = vector.load %arg9[%c0_38, %c0_39] : memref<8x128xf32, #tpu.memory_space<vmem>>, vector<8x128xf32>
    tpu.vector_store %arg9[%c0_38, %c0_39], %40 {strides = array<i32>} : memref<8x128xf32, #tpu.memory_space<vmem>>, vector<8x128xf32>,
    %c0_40 = arith.constant 0 : index
    %c0_41 = arith.constant 0 : index
    %100 = vector.load %arg10[%c0_40, %c0_41] : memref<8x128xf32, #tpu.memory_space<vmem>>, vector<8x128xf32>
    tpu.vector_store %arg10[%c0_40, %c0_41], %80 {strides = array<i32>} : memref<8x128xf32, #tpu.memory_space<vmem>>, vector<8x128xf32>,
    %c0_42 = arith.constant 0 : index
    %c0_43 = arith.constant 0 : index
    %c0_44 = arith.constant 0 : index
    %101 = vector.load %arg8[%c0_42, %c0_43, %c0_44] : memref<1x8x512xf32, #tpu.memory_space<vmem>>, vector<1x8x128xf32>
    %102 = vector.shape_cast %101 : vector<1x8x128xf32> to vector<8x128xf32>
    %103 = vector.shape_cast %98 : vector<8x128xf32> to vector<1x8x128xf32>
    tpu.vector_store %arg8[%c0_42, %c0_43, %c0_44], %103 {strides = array<i32>} : memref<1x8x512xf32, #tpu.memory_space<vmem>>, vector<1x8x128xf32>,
    %c0_45 = arith.constant 0 : index
    %c0_46 = arith.constant 0 : index
    %c128 = arith.constant 128 : index
    %104 = vector.load %arg8[%c0_45, %c0_46, %c128] : memref<1x8x512xf32, #tpu.memory_space<vmem>>, vector<1x8x128xf32>
    %105 = vector.shape_cast %104 : vector<1x8x128xf32> to vector<8x128xf32>
    %106 = vector.shape_cast %40 : vector<8x128xf32> to vector<1x8x128xf32>
    tpu.vector_store %arg8[%c0_45, %c0_46, %c128], %106 {strides = array<i32>} : memref<1x8x512xf32, #tpu.memory_space<vmem>>, vector<1x8x128xf32>,
    %c0_47 = arith.constant 0 : index
    %c0_48 = arith.constant 0 : index
    %c256 = arith.constant 256 : index
    %107 = vector.load %arg8[%c0_47, %c0_48, %c256] : memref<1x8x512xf32, #tpu.memory_space<vmem>>, vector<1x8x128xf32>
    %108 = vector.shape_cast %107 : vector<1x8x128xf32> to vector<8x128xf32>
    %109 = vector.shape_cast %80 : vector<8x128xf32> to vector<1x8x128xf32>
    tpu.vector_store %arg8[%c0_47, %c0_48, %c256], %109 {strides = array<i32>} : memref<1x8x512xf32, #tpu.memory_space<vmem>>, vector<1x8x128xf32>,
    %c0_49 = arith.constant 0 : index
    %c0_50 = arith.constant 0 : index
    %c384_51 = arith.constant 384 : index
    %110 = vector.load %arg8[%c0_49, %c0_50, %c384_51] : memref<1x8x512xf32, #tpu.memory_space<vmem>>, vector<1x8x8xf32>
    %111 = vector.shape_cast %110 : vector<1x8x8xf32> to vector<8x8xf32>
    %112 = vector.shape_cast %69 : vector<8x8xf32> to vector<1x8x8xf32>
    tpu.vector_store %arg8[%c0_49, %c0_50, %c384_51], %112 {strides = array<i32>} : memref<1x8x512xf32, #tpu.memory_space<vmem>>, vector<1x8x8xf32>,
    return
  }
  func.func @transform_0(%arg0: i32) -> (i32, i32, i32) {
    %c0_i32 = arith.constant 0 : i32
    %c0_i32_0 = arith.constant 0 : i32
    %c0_i32_1 = arith.constant 0 : i32
    return %arg0, %c0_i32, %c0_i32_0 : i32, i32, i32
  }
  func.func @transform_1(%arg0: i32) -> (i32, i32, i32) {
    %c0_i32 = arith.constant 0 : i32
    %c0_i32_0 = arith.constant 0 : i32
    %c0_i32_1 = arith.constant 0 : i32
    %c0_i32_2 = arith.constant 0 : i32
    return %c0_i32, %c0_i32_0, %c0_i32_1 : i32, i32, i32
  }
  func.func @transform_2(%arg0: i32) -> (i32, i32) {
    %c0_i32 = arith.constant 0 : i32
    %c0_i32_0 = arith.constant 0 : i32
    %c0_i32_1 = arith.constant 0 : i32
    return %c0_i32, %c0_i32_0 : i32, i32
  }
  func.func @transform_3(%arg0: i32) -> (i32, i32) {
    %c0_i32 = arith.constant 0 : i32
    %c0_i32_0 = arith.constant 0 : i32
    %c0_i32_1 = arith.constant 0 : i32
    return %c0_i32, %c0_i32_0 : i32, i32
  }
  func.func @transform_4(%arg0: i32) -> (i32, i32) {
    %c0_i32 = arith.constant 0 : i32
    %c0_i32_0 = arith.constant 0 : i32
    %c0_i32_1 = arith.constant 0 : i32
    return %c0_i32, %c0_i32_0 : i32, i32
  }
  func.func @transform_5(%arg0: i32) -> (i32, i32) {
    %c0_i32 = arith.constant 0 : i32
    %c0_i32_0 = arith.constant 0 : i32
    %c0_i32_1 = arith.constant 0 : i32
    return %c0_i32, %c0_i32_0 : i32, i32
  }
  func.func @transform_6(%arg0: i32) -> (i32, i32) {
    %c0_i32 = arith.constant 0 : i32
    %c0_i32_0 = arith.constant 0 : i32
    %c0_i32_1 = arith.constant 0 : i32
    return %c0_i32, %c0_i32_0 : i32, i32
  }
  func.func @transform_7(%arg0: i32) -> (i32, i32, i32) {
    %c0_i32 = arith.constant 0 : i32
    %c0_i32_0 = arith.constant 0 : i32
    %c0_i32_1 = arith.constant 0 : i32
    return %arg0, %c0_i32, %c0_i32_0 : i32, i32, i32
  }
}

</mosaic_0001>

<bundles_post_ra>
// kernel: attention_decoder_forward.1
= control target key start
LH: loop header
LB: loop body
LE: loop exit
PB: predicated region body
PF: predicated region fallthrough
CT: control target
= control target key end

     0   :  { %12 = vsyncpa [#allocation6], 0  ;;  %s2172_s24 = smov [#allocation5]   ;;  %s2515_s0 = inlined_call_operand.vmem [shape: s32[1,8,1], index: 0, kind: input, shape index: {}]   ;;  %s2516_s1 = inlined_call_operand.vmem [shape: f32[8,8,32], index: 1, kind: input, shape index: {}]   ;;  %s2517_s2 = inlined_call_operand.vmem [shape: f32[8,128], index: 2, kind: input, shape index: {}]   ;;  %s2518_s3 = inlined_call_operand.vmem [shape: f32[8,128], index: 3, kind: input, shape index: {}]   ;;  %s2519_s4 = inlined_call_operand.hbm [shape: bf16[384,512], index: 4, kind: input, shape index: {}]   ;;  %s2520_s5 = inlined_call_operand.vmem [shape: bf16[32,640], index: 5, kind: input, shape index: {}]   ;;  %s2521_s6 = inlined_call_operand.vmem [shape: f32[8,640], index: 6, kind: input, shape index: {}]   ;;  %s2522_s7 = inlined_call_operand.vmem [shape: f32[1,8,512], index: 7, kind: output, shape index: {}]  }
   0x1   :  { %s26_s25 = sshll.u32 %s2172_s24, 4  ;;  %s2148_s28 = scalar_lea.hbm %s2519_s4, 12288  ;;  %s27_s25 = int_to_ptr.vmem [resolvable:$true] %s26_s25 }
   0x2   :  { %p2149_p0 = scmp.ne.s32.totalorder %s2519_s4, %s2148_s28  ;;  %p2152_p1 = scmp.lt.u32.totalorder %s2148_s28, %s2519_s4 }
   0x4   :  { %p2154_p2 = pnand %p2152_p1, %p2149_p0 }
   0x6   :  { %2157 = shalt.err (!%p2154_p2)
}
   0x7   :  { %s2158_s10 = scalar_lea.vmem %s27_s25, 12288  ;;  %p2163_p4 = scmp.lt.s32.totalorder %s27_s25, %s27_s25 }
   0x8   :  { %p2159_p3 = scmp.ne.s32.totalorder %s27_s25, %s2158_s10  ;;  %p2164_p5 = scmp.lt.s32.totalorder %s2158_s10, %s2158_s10 }
   0xa   :  { %p2165_p6 = por %p2164_p5, %p2163_p4 }
   0xc   :  { %p2166_p7 = pnand %p2165_p6, %p2159_p3 }
   0xe   :  { %2169 = shalt.err (!%p2166_p7)
}
   0xf   :  { %s2173_s11 = smov 256   ;;  %s2174_s12 = smov 16  }
  0x10   :  { %32 = dma.hbm_to_vmem [thread:$0]  %s2519_s4, 12288, %s27_s25, [#allocation6], %s2173_s11, %s2173_s11, %s2174_s12  }
  0x11   :  { %2170 = dma.done.wait [#allocation6], 12288  }
  0x12   :  { %2171 = vsyncadd [#allocation6], 4294955008  ;;  %v2175_v0 = vmov 0   ;;  %v166_v1 = vld [vmem:[%s2515_s0] sm:$0xff]  ;;  %v1943_v2 = vld [vmem:[%s2520_s5 + $0x8] ss:$20 sps:$4 sm:$0xff]  }
  0x13   :  { %1941 = vset.pattern.permute.xlu0 %v2175_v0  ;;  %1942 = vset.pattern.permute.xlu1 %v2175_v0  ;;  %v1944_v3 = vld [vmem:[%s2520_s5 + $0x30] ss:$20 sps:$4 sm:$0xff]   ;;  %v50_v5 = vld [vmem:[%s2516_s1 + $0x8] sm:$0xff]  ;;  %vm78_vm0 = vcmask 261120   ;;  %v52_v10 = vld [vmem:[%s2516_s1 + $0x18] sm:$0xff]  ;;  %vm1229_vm3 = vcmask 1041409  }
  0x14   :  { %170 = vperm.xlu0 %1941, %v166_v1   ;;  %v49_v4 = vld [vmem:[%s2516_s1] sm:$0xff]  ;;  %1899 = vmatprep.subr.bf16.mxu0 %v1943_v2  ;;  %v1949_v8 = vld [vmem:[#allocation5 + $0xc] ss:$16 sps:$4 sm:$0xff]   ;;  %v51_v9 = vld [vmem:[%s2516_s1 + $0x10] sm:$0xff]  ;;  %vm1231_vm4 = vcmask 1042434   ;;  %vm1233_vm5 = vcmask 1043459  }
  0x15   :  { %v57_v6 = vpack.c.bf16 %v50_v5, %v49_v4  ;;  %v1945_v7 = vld [vmem:[#allocation5 + $0x4] ss:$16 sps:$4 sm:$0xff]   ;;  %1900 = vmatpush3.bf16.msra.mxu0 %v1943_v2  ;;  %v1950_v11 = vld [vmem:[#allocation5] ss:$16 sps:$4 sm:$0xff]   ;;  %v58_v12 = vpack.c.bf16 %v52_v10, %v51_v9  ;;  %v1947_v14 = vld [vmem:[#allocation5 + $0x8] ss:$16 sps:$4 sm:$0xff]  }
  0x16   :  { %1901 = vmatprep.subr.bf16.mxu0 %v1944_v3  ;;  %776 = vmatprep.subr.bf16.mxu1 %v1945_v7  ;;  %v1951_v13 = vld [vmem:[#allocation5 + $0x24] ss:$16 sps:$4 sm:$0xff]   ;;  %v1955_v15 = vld [vmem:[#allocation5 + $0x2c] ss:$16 sps:$4 sm:$0xff]   ;;  %v1956_v16 = vld [vmem:[#allocation5 + $0x20] ss:$16 sps:$4 sm:$0xff]  }
  0x17   :  { %1903 = vmatprep.mubr.msk.bf16.mxu0 %vm78_vm0, %v57_v6  ;;  %777 = vmatpush1.bf16.msra.mxu1 %v1950_v11  ;;  %v1957_v17 = vld [vmem:[#allocation5 + $0x44] ss:$16 sps:$4 sm:$0xff]   ;;  %v1953_v18 = vld [vmem:[#allocation5 + $0x28] ss:$16 sps:$4 sm:$0xff]   ;;  %v1962_v19 = vld [vmem:[#allocation5 + $0x40] ss:$16 sps:$4 sm:$0xff]  }
  0x18   :  { %778 = vmatprep.subr.bf16.mxu1 %v1951_v13  ;;  %v1961_v20 = vld [vmem:[#allocation5 + $0x4c] ss:$16 sps:$4 sm:$0xff]   ;;  %v1963_v21 = vld [vmem:[#allocation5 + $0x64] ss:$16 sps:$4 sm:$0xff]   ;;  %v1959_v22 = vld [vmem:[#allocation5 + $0x48] ss:$16 sps:$4 sm:$0xff]  }
  0x19   :  { %1902 = vmatpush3.bf16.msra.mxu0 %v1944_v3  ;;  %v1967_v23 = vld [vmem:[#allocation5 + $0x6c] ss:$16 sps:$4 sm:$0xff]   ;;  %v1968_v24 = vld [vmem:[#allocation5 + $0x60] ss:$16 sps:$4 sm:$0xff]   ;;  %v1969_v25 = vld [vmem:[#allocation5 + $0x84] ss:$16 sps:$4 sm:$0xff]  }
  0x1a   :  { %858 = vmatprep.subr.bf16.mxu0 %v1949_v8  ;;  %v1965_v26 = vld [vmem:[#allocation5 + $0x68] ss:$16 sps:$4 sm:$0xff]   ;;  %v1974_v27 = vld [vmem:[#allocation5 + $0x80] ss:$16 sps:$4 sm:$0xff]   ;;  %v1973_v28 = vld [vmem:[#allocation5 + $0x8c] ss:$16 sps:$4 sm:$0xff]  }
  0x1b   :  { %779 = vmatpush1.bf16.msra.mxu1 %v1956_v16  ;;  %v1975_v29 = vld [vmem:[#allocation5 + $0xa4] ss:$16 sps:$4 sm:$0xff]   ;;  %v1971_v30 = vld [vmem:[#allocation5 + $0x88] ss:$16 sps:$4 sm:$0xff]   ;;  %v1979_v31 = vld [vmem:[#allocation5 + $0xac] ss:$16 sps:$4 sm:$0xff]  }
  0x1c   :  { %1904 = vmatmul.mubr.msk.bf16.vlgmr.msra.gmra.mrb[0].mxu0 %vm78_vm0, %v58_v12  ;;  %780 = vmatprep.subr.bf16.mxu1 %v1957_v17  ;;  %v1980_v32 = vld [vmem:[#allocation5 + $0xa0] ss:$16 sps:$4 sm:$0xff]   ;;  %v1981_v33 = vld [vmem:[#allocation5 + $0xc4] ss:$16 sps:$4 sm:$0xff]   ;;  %v1977_v34 = vld [vmem:[#allocation5 + $0xa8] ss:$16 sps:$4 sm:$0xff]  }
  0x1d   :  { %859 = vmatpush1.bf16.msra.mxu0 %v1947_v14  ;;  %v1986_v35 = vld [vmem:[#allocation5 + $0xc0] ss:$16 sps:$4 sm:$0xff]   ;;  %v1985_v36 = vld [vmem:[#allocation5 + $0xcc] ss:$16 sps:$4 sm:$0xff]   ;;  %v1987_v37 = vld [vmem:[#allocation5 + $0xe4] ss:$16 sps:$4 sm:$0xff]  }
  0x1e   :  { %860 = vmatprep.subr.bf16.mxu0 %v1955_v15  ;;  %v1983_v38 = vld [vmem:[#allocation5 + $0xc8] ss:$16 sps:$4 sm:$0xff]   ;;  %v1991_v39 = vld [vmem:[#allocation5 + $0xec] ss:$16 sps:$4 sm:$0xff]   ;;  %v1992_v40 = vld [vmem:[#allocation5 + $0xe0] ss:$16 sps:$4 sm:$0xff]  }
  0x1f   :  { %781 = vmatpush1.bf16.msra.mxu1 %v1962_v19  ;;  %v1993_v41 = vld [vmem:[#allocation5 + $0x104] ss:$16 sps:$4 sm:$0xff]   ;;  %v1989_v42 = vld [vmem:[#allocation5 + $0xe8] ss:$16 sps:$4 sm:$0xff]   ;;  %v1998_v43 = vld [vmem:[#allocation5 + $0x100] ss:$16 sps:$4 sm:$0xff]  }
  0x20   :  { %782 = vmatprep.subr.bf16.mxu1 %v1963_v21  ;;  %v1997_v44 = vld [vmem:[#allocation5 + $0x10c] ss:$16 sps:$4 sm:$0xff]   ;;  %v1999_v45 = vld [vmem:[#allocation5 + $0x124] ss:$16 sps:$4 sm:$0xff]   ;;  %v1995_v46 = vld [vmem:[#allocation5 + $0x108] ss:$16 sps:$4 sm:$0xff]   ;;  %v167_v21 = vlaneseq }
  0x21   :  { %861 = vmatpush1.bf16.msra.mxu0 %v1953_v18  ;;  %v2003_v47 = vld [vmem:[#allocation5 + $0x12c] ss:$16 sps:$4 sm:$0xff]   ;;  %v2004_v48 = vld [vmem:[#allocation5 + $0x120] ss:$16 sps:$4 sm:$0xff]   ;;  %v2005_v49 = vld [vmem:[#allocation5 + $0x144] ss:$16 sps:$4 sm:$0xff]  }
  0x22   :  { %862 = vmatprep.subr.bf16.mxu0 %v1961_v20  ;;  %v53_v50 = vld [vmem:[%s2516_s1 + $0x20] sm:$0xff]  ;;  %v54_v51 = vld [vmem:[%s2516_s1 + $0x28] sm:$0xff]  ;;  %v55_v56 = vld [vmem:[%s2516_s1 + $0x30] sm:$0xff]  ;;  %vm1235_vm6 = vcmask 1044484   ;;  %vm1237_vm7 = vcmask 1045509   ;;  %vm1239_vm8 = vcmask 1046534  }
  0x23   :  { %783 = vmatpush1.bf16.msra.mxu1 %v1968_v24  ;;  %v59_v52 = vpack.c.bf16 %v54_v51, %v53_v50  ;;  %v2001_v53 = vld [vmem:[#allocation5 + $0x128] ss:$16 sps:$4 sm:$0xff]   ;;  %v2009_v54 = vld [vmem:[#allocation5 + $0x14c] ss:$16 sps:$4 sm:$0xff]   ;;  %v2010_v55 = vld [vmem:[#allocation5 + $0x140] ss:$16 sps:$4 sm:$0xff]  }
  0x24   :  { %784 = vmatprep.subr.bf16.mxu1 %v1969_v25  ;;  %v56_v57 = vld [vmem:[%s2516_s1 + $0x38] sm:$0xff]  ;;  %v2011_v58 = vld [vmem:[#allocation5 + $0x164] ss:$16 sps:$4 sm:$0xff]   ;;  %v2016_v63 = vld [vmem:[#allocation5 + $0x160] ss:$16 sps:$4 sm:$0xff]   ;;  %vm1241_vm9 = vcmask 1047559  }
  0x25   :  { %863 = vmatpush1.bf16.msra.mxu0 %v1959_v22  ;;  %v60_v59 = vpack.c.bf16 %v56_v57, %v55_v56  ;;  %1907 = vmatprep.mubr.msk.bf16.mxu0 %vm78_vm0, %v59_v52  ;;  %v2007_v60 = vld [vmem:[#allocation5 + $0x148] ss:$16 sps:$4 sm:$0xff]   ;;  %v2015_v61 = vld [vmem:[#allocation5 + $0x16c] ss:$16 sps:$4 sm:$0xff]   ;;  %v47_v62 = vld [vmem:[%s2518_s3] sm:$0xff]  ;;  %v2275_v22 = vand.u32 127, %v167_v21 }
  0x26   :  { %864 = vmatprep.subr.bf16.mxu0 %v1967_v23  ;;  %v176_v1 = vpack.c.bf16 %v47_v62, %v47_v62  ;;  %v2017_v2 = vld [vmem:[#allocation5 + $0x184] ss:$16 sps:$4 sm:$0xff]   ;;  %v2013_v3 = vld [vmem:[#allocation5 + $0x168] ss:$16 sps:$4 sm:$0xff]   ;;  %v2021_v4 = vld [vmem:[#allocation5 + $0x18c] ss:$16 sps:$4 sm:$0xff]  }
  0x27   :  { %785 = vmatpush1.bf16.msra.mxu1 %v1974_v27  ;;  %1908 = vmatmul.mubr.msk.bf16.gmra.mrb[4].mxu0 %vm78_vm0, %v60_v59  ;;  %v2022_v5 = vld [vmem:[#allocation5 + $0x180] ss:$16 sps:$4 sm:$0xff]   ;;  %v2023_v6 = vld [vmem:[#allocation5 + $0x1a4] ss:$16 sps:$4 sm:$0xff]   ;;  %v2019_v7 = vld [vmem:[#allocation5 + $0x188] ss:$16 sps:$4 sm:$0xff]  }
  0x28   :  { %786 = vmatprep.subr.bf16.mxu1 %v1975_v29  ;;  %808 = vmatprep.mubr.bf16.mxu1 %v176_v1  ;;  %v2027_v8 = vld [vmem:[#allocation5 + $0x1ac] ss:$16 sps:$4 sm:$0xff]   ;;  %v2028_v9 = vld [vmem:[#allocation5 + $0x1a0] ss:$16 sps:$4 sm:$0xff]   ;;  %v2029_v10 = vld [vmem:[#allocation5 + $0x1c4] ss:$16 sps:$4 sm:$0xff]  }
  0x29   :  { %865 = vmatpush1.bf16.msra.mxu0 %v1965_v26  ;;  %890 = vmatprep.mubr.bf16.mxu0 %v176_v1  ;;  %v2025_v11 = vld [vmem:[#allocation5 + $0x1a8] ss:$16 sps:$4 sm:$0xff]   ;;  %v2033_v12 = vld [vmem:[#allocation5 + $0x1cc] ss:$16 sps:$4 sm:$0xff]   ;;  %v2034_v13 = vld [vmem:[#allocation5 + $0x1c0] ss:$16 sps:$4 sm:$0xff]  }
  0x2a   :  { %866 = vmatprep.subr.bf16.mxu0 %v1973_v28  ;;  %v2035_v14 = vld [vmem:[#allocation5 + $0x1e4] ss:$16 sps:$4 sm:$0xff]   ;;  %v2031_v15 = vld [vmem:[#allocation5 + $0x1c8] ss:$16 sps:$4 sm:$0xff]   ;;  %v2039_v16 = vld [vmem:[#allocation5 + $0x1ec] ss:$16 sps:$4 sm:$0xff]  }
  0x2b   :  { %787 = vmatpush1.bf16.msra.mxu1 %v1980_v32  ;;  %v2040_v17 = vld [vmem:[#allocation5 + $0x1e0] ss:$16 sps:$4 sm:$0xff]   ;;  %v2043_v18 = vld [vmem:[#allocation5 + $0x204] ss:$16 sps:$4 sm:$0xff]   ;;  %v2037_v19 = vld [vmem:[#allocation5 + $0x1e8] ss:$16 sps:$4 sm:$0xff]  }
  0x2c   :  { %788 = vmatprep.subr.bf16.mxu1 %v1981_v33  ;;  %v2046_v20 = vld [vmem:[#allocation5 + $0x20c] ss:$16 sps:$4 sm:$0xff]   ;;  %v2041_v24 = vld [vmem:[#allocation5 + $0x200] ss:$16 sps:$4 sm:$0xff]   ;;  %v2044_v25 = vld [vmem:[#allocation5 + $0x208] ss:$16 sps:$4 sm:$0xff]  }
  0x2d   :  { %867 = vmatpush1.bf16.msra.mxu0 %v1971_v30  ;;  %v2049_v26 = vld [vmem:[#allocation5 + $0x224] ss:$16 sps:$4 sm:$0xff]   ;;  %v2052_v27 = vld [vmem:[#allocation5 + $0x22c] ss:$16 sps:$4 sm:$0xff]   ;;  %v2176_v28 = vmov 1.0|1.0  }
  0x2e   :  { %868 = vmatprep.subr.bf16.mxu0 %v1979_v31  ;;  %v2047_v29 = vld [vmem:[#allocation5 + $0x220] ss:$16 sps:$4 sm:$0xff]   ;;  %v2050_v30 = vld [vmem:[#allocation5 + $0x228] ss:$16 sps:$4 sm:$0xff]   ;;  %v2055_v31 = vld [vmem:[#allocation5 + $0x244] ss:$16 sps:$4 sm:$0xff]  }
  0x2f   :  { %789 = vmatpush1.bf16.msra.mxu1 %v1986_v35  ;;  %v2058_v32 = vld [vmem:[#allocation5 + $0x24c] ss:$16 sps:$4 sm:$0xff]   ;;  %v2053_v33 = vld [vmem:[#allocation5 + $0x240] ss:$16 sps:$4 sm:$0xff]   ;;  %v2061_v35 = vld [vmem:[#allocation5 + $0x264] ss:$16 sps:$4 sm:$0xff]  }
  0x30   :  { %790 = vmatprep.subr.bf16.mxu1 %v1987_v37  ;;  %v2059_v37 = vld [vmem:[#allocation5 + $0x260] ss:$16 sps:$4 sm:$0xff]   ;;  %v2080_v50 = vld [vmem:[#allocation5 + $0x2c8] ss:$16 sps:$4 sm:$0xff]   ;;  %v2085_v51 = vld [vmem:[#allocation5 + $0x2e4] ss:$16 sps:$4 sm:$0xff]  }
  0x31   :  { %869 = vmatpush1.bf16.msra.mxu0 %v1977_v34  ;;  %v2056_v34 = vld [vmem:[#allocation5 + $0x248] ss:$16 sps:$4 sm:$0xff]   ;;  %v2088_v52 = vld [vmem:[#allocation5 + $0x2ec] ss:$16 sps:$4 sm:$0xff]   ;;  %v65_v57 = vld [vmem:[%s2521_s6 + $0x11] ss:$0 sm:$0xff] }
  0x32   :  { %870 = vmatprep.subr.bf16.mxu0 %v1985_v36  ;;  %v2064_v36 = vld [vmem:[#allocation5 + $0x26c] ss:$16 sps:$4 sm:$0xff]   ;;  %vm1244_vm10 = vcmask 64512   ;;  %vm2179_vm11 = vmmov 0  }
  0x33   :  { %791 = vmatpush1.bf16.msra.mxu1 %v1992_v40  ;;  %v2070_v40 = vld [vmem:[#allocation5 + $0x28c] ss:$16 sps:$4 sm:$0xff]  }
  0x34   :  { %792 = vmatprep.subr.bf16.mxu1 %v1993_v41  ;;  %v2065_v41 = vld [vmem:[#allocation5 + $0x280] ss:$16 sps:$4 sm:$0xff]  }
  0x35   :  { %871 = vmatpush1.bf16.msra.mxu0 %v1983_v38  ;;  %v2062_v38 = vld [vmem:[#allocation5 + $0x268] ss:$16 sps:$4 sm:$0xff]  }
  0x36   :  { %872 = vmatprep.subr.bf16.mxu0 %v1991_v39  ;;  %v2067_v39 = vld [vmem:[#allocation5 + $0x284] ss:$16 sps:$4 sm:$0xff]  }
  0x37   :  { %793 = vmatpush1.bf16.msra.mxu1 %v1998_v43  ;;  %v2073_v43 = vld [vmem:[#allocation5 + $0x2a4] ss:$16 sps:$4 sm:$0xff]  }
  0x38   :  { %794 = vmatprep.subr.bf16.mxu1 %v1999_v45  ;;  %v2071_v45 = vld [vmem:[#allocation5 + $0x2a0] ss:$16 sps:$4 sm:$0xff]  }
  0x39   :  { %873 = vmatpush1.bf16.msra.mxu0 %v1989_v42  ;;  %v2068_v42 = vld [vmem:[#allocation5 + $0x288] ss:$16 sps:$4 sm:$0xff]  }
  0x3a   :  { %874 = vmatprep.subr.bf16.mxu0 %v1997_v44  ;;  %v2076_v44 = vld [vmem:[#allocation5 + $0x2ac] ss:$16 sps:$4 sm:$0xff]  }
  0x3b   :  { %795 = vmatpush1.bf16.msra.mxu1 %v2004_v48  ;;  %v2082_v48 = vld [vmem:[#allocation5 + $0x2cc] ss:$16 sps:$4 sm:$0xff]  }
  0x3c   :  { %796 = vmatprep.subr.bf16.mxu1 %v2005_v49  ;;  %v2077_v49 = vld [vmem:[#allocation5 + $0x2c0] ss:$16 sps:$4 sm:$0xff]  }
  0x3d   :  { %875 = vmatpush1.bf16.msra.mxu0 %v1995_v46  ;;  %v2074_v46 = vld [vmem:[#allocation5 + $0x2a8] ss:$16 sps:$4 sm:$0xff]  }
  0x3e   :  { %876 = vmatprep.subr.bf16.mxu0 %v2003_v47  ;;  %v2079_v47 = vld [vmem:[#allocation5 + $0x2c4] ss:$16 sps:$4 sm:$0xff]  }
  0x3f   :  { %797 = vmatpush1.bf16.msra.mxu1 %v2010_v55  ;;  %v2283_v55 = vld [vmem:[%s2517_s2] sm:$0xff] }
  0x40   :  { %798 = vmatprep.subr.bf16.mxu1 %v2011_v58  ;;  %v177_v56 = vpack.c.bf16 %v2283_v55, %v2283_v55 }
  0x41   :  { %877 = vmatpush1.bf16.msra.mxu0 %v2001_v53  ;;  %v2083_v53 = vld [vmem:[#allocation5 + $0x2e0] ss:$16 sps:$4 sm:$0xff]  }
  0x42   :  { %878 = vmatprep.subr.bf16.mxu0 %v2009_v54  ;;  %v2086_v54 = vld [vmem:[#allocation5 + $0x2e8] ss:$16 sps:$4 sm:$0xff]  }
  0x43   :  { %799 = vmatpush1.bf16.msra.mxu1 %v2016_v63 }
  0x44   :  { %800 = vmatprep.subr.bf16.mxu1 %v2017_v2 }
  0x45   :  { %879 = vmatpush1.bf16.msra.mxu0 %v2007_v60 }
  0x46   :  { %880 = vmatprep.subr.bf16.mxu0 %v2015_v61 }
  0x47   :  { %801 = vmatpush1.bf16.msra.mxu1 %v2022_v5 }
  0x48   :  { %802 = vmatprep.subr.bf16.mxu1 %v2023_v6 }
  0x49   :  { %881 = vmatpush1.bf16.msra.mxu0 %v2013_v3 }
  0x4a   :  { %882 = vmatprep.subr.bf16.mxu0 %v2021_v4 }
  0x4b   :  { %803 = vmatpush1.bf16.msra.mxu1 %v2028_v9 }
  0x4c   :  { %804 = vmatprep.subr.bf16.mxu1 %v2029_v10  ;;  %v2089_v10 = vld [vmem:[%s2520_s5] ss:$20 sps:$4 sm:$0xff]  }
  0x4d   :  { %883 = vmatpush1.bf16.msra.mxu0 %v2019_v7 }
  0x4e   :  { %884 = vmatprep.subr.bf16.mxu0 %v2027_v8 }
  0x4f   :  { %805 = vmatpush1.bf16.msra.mxu1 %v2034_v13  ;;  %v2092_v13 = vld [vmem:[%s2520_s5 + $0x28] ss:$20 sps:$4 sm:$0xff]  }
  0x50   :  { %806 = vmatprep.subr.bf16.mxu1 %v2035_v14 }
  0x51   :  { %885 = vmatpush1.bf16.msra.mxu0 %v2025_v11  ;;  %v2091_v11 = vld [vmem:[%s2520_s5 + $0x4] ss:$20 sps:$4 sm:$0xff]  }
  0x52   :  { %886 = vmatprep.subr.bf16.mxu0 %v2033_v12  ;;  %v2094_v12 = vld [vmem:[%s2520_s5 + $0x2c] ss:$20 sps:$4 sm:$0xff]  }
  0x53   :  { %807 = vmatpush1.bf16.msra.mxu1 %v2040_v17 }
  0x54   :  { %817 = vmatprep.subr.bf16.mxu1 %v2043_v18  ;;  %v2312_v18 = vshrl.u32 %v167_v21, 7 }
  0x55   :  { %887 = vmatpush1.bf16.msra.mxu0 %v2031_v15 }
  0x56   :  { %888 = vmatprep.subr.bf16.mxu0 %v2039_v16  ;;  %v2329_v21 = vsub.s32 1, %v2312_v18 }
  0x59   :  { %889 = vmatpush1.bf16.msra.mxu0 %v2037_v19  ;;  %v2315_v19 = vsub.s32 2, %v2312_v18 }
  0x5a   :  { %899 = vmatprep.subr.bf16.mxu0 %v2046_v20  ;;  %v274_v20 = vld [vmem:[%s2521_s6] ss:$8 sm:$0xf] }
  0x93   :  { %v171_v23 = vpop.permute.xlu0 %170 }
  0x94   :  { %vm172_vm1 = vcmp.eq.s32.totalorder %v2275_v22, %v171_v23  ;;  %v2321_v23 = vsub.s32 3, %v2312_v18 }
  0x95   :  { %vm1869_vm2 = vmpackc.low %vm172_vm1, %vm172_vm1 }
  0x96   :  { %1870 = vmatmul.mubr.msk.bf16.vlgmr.msra.gmra.mrb[0].mxu1 %vm1869_vm2, %v2176_v28  ;;  %1872 = vmatmul.mubr.msk.bf16.vlgmr.msra.gmra.mrb[8].mxu0 %vm1869_vm2, %v2176_v28 }
  0x97   :  { %818 = vmatpush1.bf16.msra.mxu1 %v2041_v24  ;;  %900 = vmatpush1.bf16.msra.mxu0 %v2044_v25  ;;  %v2324_v24 = vsub.s32 0, %v2312_v18  ;;  %v287_v25 = vrot.slane %v274_v20, %v2315_v19 }
  0x98   :  { %819 = vmatprep.subr.bf16.mxu1 %v2049_v26  ;;  %901 = vmatprep.subr.bf16.mxu0 %v2052_v27  ;;  %v291_v26 = vrot.slane %v274_v20, %v2321_v23 }
  0x99   :  { %849 = vmatprep.mubr.bf16.mxu1 %v2175_v0  ;;  %931 = vmatprep.mubr.bf16.mxu0 %v2175_v0  ;;  %v279_v27 = vrot.slane %v274_v20, %v2324_v24 }
  0x9b   :  { %820 = vmatpush1.bf16.msra.mxu1 %v2047_v29  ;;  %902 = vmatpush1.bf16.msra.mxu0 %v2050_v30 }
  0x9c   :  { %821 = vmatprep.subr.bf16.mxu1 %v2055_v31  ;;  %903 = vmatprep.subr.bf16.mxu0 %v2058_v32  ;;  %v283_v32 = vrot.slane %v274_v20, %v2329_v21 }
  0x9f   :  { %822 = vmatpush1.bf16.msra.mxu1 %v2053_v33  ;;  %904 = vmatpush1.bf16.msra.mxu0 %v2056_v34 }
  0xa0   :  { %823 = vmatprep.subr.bf16.mxu1 %v2061_v35  ;;  %905 = vmatprep.subr.bf16.mxu0 %v2064_v36 }
  0xa3   :  { %824 = vmatpush1.bf16.msra.mxu1 %v2059_v37  ;;  %906 = vmatpush1.bf16.msra.mxu0 %v2062_v38 }
  0xa4   :  { %825 = vmatprep.subr.bf16.mxu1 %v2067_v39  ;;  %907 = vmatprep.subr.bf16.mxu0 %v2070_v40 }
  0xa7   :  { %826 = vmatpush1.bf16.msra.mxu1 %v2065_v41  ;;  %908 = vmatpush1.bf16.msra.mxu0 %v2068_v42 }
  0xa8   :  { %827 = vmatprep.subr.bf16.mxu1 %v2073_v43  ;;  %909 = vmatprep.subr.bf16.mxu0 %v2076_v44 }
  0xab   :  { %828 = vmatpush1.bf16.msra.mxu1 %v2071_v45  ;;  %910 = vmatpush1.bf16.msra.mxu0 %v2074_v46 }
  0xac   :  { %829 = vmatprep.subr.bf16.mxu1 %v2079_v47  ;;  %911 = vmatprep.subr.bf16.mxu0 %v2082_v48 }
  0xaf   :  { %830 = vmatpush1.bf16.msra.mxu1 %v2077_v49  ;;  %912 = vmatpush1.bf16.msra.mxu0 %v2080_v50 }
  0xb0   :  { %831 = vmatprep.subr.bf16.mxu1 %v2085_v51  ;;  %913 = vmatprep.subr.bf16.mxu0 %v2088_v52 }
  0xb3   :  { %832 = vmatpush1.bf16.msra.mxu1 %v2083_v53  ;;  %914 = vmatpush1.bf16.msra.mxu0 %v2086_v54 }
  0xb4   :  { %1001 = vmatprep.subr.bf16.mxu1 %v2091_v11 }
  0xb6   :  { %850 = vmatmul.mubr.bf16.vlgmr.msra.gmra.mrb[0].mxu1 %v177_v56  ;;  %932 = vmatmul.mubr.bf16.vlgmr.msra.gmra.mrb[12].mxu0 %v177_v56 }
  0xb7   :  { %1033 = vmatprep.mubr.bf16.mxu1 %v2175_v0  ;;  %1002 = vmatpush1.bf16.msra.mxu1 %v2089_v10 }
  0xb8   :  { %1003 = vmatprep.subr.bf16.mxu1 %v2094_v12 }
  0xbb   :  { %1004 = vmatpush1.bf16.msra.mxu1 %v2092_v13 }
  0xef   :  { %v1905_v58 = vpop.f32.mrb[0].mxu0 }
  0xf0   :  { %v134_v59 = vadd.f32 %v1905_v58, %v65_v57  ;;  %v125_v60 = vpop.f32.mrb[1].mxu0 }
  0xf1   :  { %v126_v61 = vadd.f32 %v125_v60, %v65_v57  ;;  %v1906_v62 = vpop.f32.mrb[2].mxu0  ;;  %v2177_v60 = vmov 1966171168  }
  0xf2   :  { %158 = vst.msk [vmem:[#allocation4 + $0x10] sm:$0xff] %vm78_vm0, %v134_v59  ;;  %v137_v63 = vadd.f32 %v1906_v62, %v65_v57  ;;  %v128_v1 = vpop.f32.mrb[3].mxu0  ;;  %v2341_v62 = vld [vmem:[%s2521_s6 + $0x1] ss:$8 sm:$0x3] }
  0xf3   :  { %156 = vst.msk [vmem:[#allocation4] sm:$0xff] %vm78_vm0, %v126_v61  ;;  %v129_v2 = vadd.f32 %v128_v1, %v65_v57  ;;  %v1053_v61 = vunpack.c.l.s4 %v2177_v60 }
  0xf4   :  { %159 = vst.msk [vmem:[#allocation4 + $0x18] sm:$0xff] %vm78_vm0, %v137_v63 }
  0xf5   :  { %157 = vst.msk [vmem:[#allocation4 + $0x8] sm:$0xff] %vm78_vm0, %v129_v2  ;;  %v1054_v63 = vunpack.c.0.s8 %v1053_v61 }
  0xf7   :  { %v1057_v1 = vsub.s32 %v1054_v63, %v2312_v18 }
  0xfa   :  { %v1909_v0 = vpop.f32.mrb[4].mxu0 }
  0xfb   :  { %v150_v3 = vadd.f32 %v1909_v0, %v65_v57  ;;  %v141_v4 = vpop.f32.mrb[5].mxu0 }
  0xfc   :  { %v142_v5 = vadd.f32 %v141_v4, %v65_v57  ;;  %v1910_v6 = vpop.f32.mrb[6].mxu0 }
  0xfd   :  { %162 = vst.msk [vmem:[#allocation4 + $0x30] sm:$0xff] %vm78_vm0, %v150_v3  ;;  %v153_v7 = vadd.f32 %v1910_v6, %v65_v57  ;;  %v144_v8 = vpop.f32.mrb[7].mxu0 }
  0xfe   :  { %160 = vst.msk [vmem:[#allocation4 + $0x20] sm:$0xff] %vm78_vm0, %v142_v5  ;;  %v145_v9 = vadd.f32 %v144_v8, %v65_v57 }
  0xff   :  { %163 = vst.msk [vmem:[#allocation4 + $0x38] sm:$0xff] %vm78_vm0, %v153_v7 }
 0x100   :  { %161 = vst.msk [vmem:[#allocation4 + $0x28] sm:$0xff] %vm78_vm0, %v145_v9 }
 0x169   :  { %v892_v14 = vpop.f32.mrb[8].mxu0 }
 0x16a   :  { %v894_v15 = vpop.f32.mrb[9].mxu0  ;;  %v893_v28 = vadd.f32 %v892_v14, %v287_v25 }
 0x16b   :  { %v896_v16 = vpop.f32.mrb[10].mxu0  ;;  %v895_v29 = vadd.f32 %v894_v15, %v291_v26  ;;  %v1042_v15 = vld [vmem:[#allocation4] sm:$0xff] }
 0x16c   :  { %v897_v17 = vpop.f32.mrb[11].mxu0 }
 0x189   :  { %v851_v30 = vpop.f32.mrb[0].mxu1  ;;  %v933_v31 = vpop.f32.mrb[12].mxu0 }
 0x18a   :  { %v1927_v33 = vadd.f32 %v851_v30, %v279_v27  ;;  %v934_v34 = vadd.f32 %v933_v31, %v893_v28  ;;  %v853_v35 = vpop.f32.mrb[1].mxu1  ;;  %v935_v36 = vpop.f32.mrb[13].mxu0  ;;  %v1043_v28 = vld [vmem:[#allocation4 + $0x8] sm:$0xff] }
 0x18b   :  { %v936_v37 = vadd.f32 %v935_v36, %v895_v29  ;;  %v855_v38 = vpop.f32.mrb[2].mxu1  ;;  %v937_v39 = vpop.f32.mrb[14].mxu0  ;;  %v1928_v43 = vadd.f32 %v853_v35, %v283_v32  ;;  %v1044_v29 = vld [vmem:[#allocation4 + $0x10] sm:$0xff]  ;;  %v1046_v32 = vld [vmem:[#allocation4 + $0x20] sm:$0xff]  ;;  %v1045_v36 = vld [vmem:[#allocation4 + $0x18] sm:$0xff] }
 0x18c   :  { %v1873_v40 = vmul.f32 -1.442695, %v1927_v33  ;;  %v856_v41 = vpop.f32.mrb[3].mxu1  ;;  %v938_v42 = vpop.f32.mrb[15].mxu0 }
 0x18d   :  { %v1874_v44 = vmul.f32 -1.442695, %v1928_v43  ;;  %v1047_v41 = vld [vmem:[#allocation4 + $0x28] sm:$0xff] }
 0x18e   :  { %2099 = vpow2.f32 %v1873_v40  ;;  %v1156_v40 = vld [vmem:[%s2521_s6 + $0x2] ss:$0 sm:$0xff] }
 0x18f   :  { %2101 = vpow2.f32 %v1874_v44 }
 0x198   :  { %v2100_v45 = vpop.eup %2099 }
 0x199   :  { %v943_v46 = vadd.f32 1.0, %v2100_v45  ;;  %v2102_v47 = vpop.eup %2101 }
 0x19a   :  { %v949_v48 = vadd.f32 1.0, %v2102_v47 }
 0x19b   :  { %2103 = vrcp.f32 %v943_v46 }
 0x19c   :  { %2105 = vrcp.f32 %v949_v48 }
 0x1a5   :  { %v2104_v49 = vpop.eup %2103 }
 0x1a6   :  { %v952_v50 = vmul.f32 %v2104_v49, %v936_v37  ;;  %v2106_v52 = vpop.eup %2105  ;;  %v1048_v49 = vld [vmem:[#allocation4 + $0x30] sm:$0xff] }
 0x1a7   :  { %v955_v53 = vsub.f32 1.0, %v2106_v52  ;;  %v957_v56 = vmul.f32 %v2106_v52, %v2283_v55  ;;  %v970_v55 = vrot.slane %v2341_v62, %v2324_v24 }
 0x1a8   :  { %v953_v51 = vadd.f32 %v952_v50, %v934_v34 }
 0x1aa   :  { %2107 = vtanh.f32 %v953_v51 }
 0x1b4   :  { %v2108_v54 = vpop.eup %2107 }
 0x1b5   :  { %v956_v57 = vmul.f32 %v2108_v54, %v955_v53 }
 0x1b7   :  { %v958_v58 = vadd.f32 %v957_v56, %v956_v57 }
 0x1b9   :  { %v959_v59 = vpack.c.bf16 %v958_v58, %v958_v58  ;;  %1718 = vst [vmem:[%s2522_s7 + $0x8] sm:$0xff] %v958_v58  ;;  %v1049_v58 = vld [vmem:[#allocation4 + $0x38] sm:$0xff] }
 0x1bb   :  { %1880 = vmatmul.mubr.msk.bf16.vlgmr.msra.gmra.mrb[4].mxu1 %vm78_vm0, %v959_v59 }
 0x28e   :  { %v1035_v2 = vpop.f32.mrb[4].mxu1 }
 0x28f   :  { %v1036_v0 = vadd.f32 %v1035_v2, %v970_v55  ;;  %v2346_v3 = vpop.f32.mrb[5].mxu1 }
 0x290   :  { %v1039_v4 = vpop.f32.mrb[6].mxu1 }
 0x291   :  { %v1051_v5 = vcombine.high %v1036_v0, %v1036_v0  ;;  %v1058_v6 = vrot.slane %v1036_v0, %v1057_v1  ;;  %v1040_v7 = vpop.f32.mrb[7].mxu1 }
 0x293   :  { %v1065_v8 = vrot.slane %v1051_v5, %v1057_v1  ;;  %v1066_v9 = vcombine.high %v1058_v6, %v1058_v6  ;;  %v1074_v10 = vrot.slane %v1058_v6, %v1057_v1 }
 0x295   :  { %v1081_v11 = vrot.slane %v1065_v8, %v1057_v1  ;;  %v1088_v12 = vrot.slane %v1066_v9, %v1057_v1  ;;  %v1096_v13 = vcombine.high %v1074_v10, %v1074_v10  ;;  %v1103_v14 = vrot.slane %v1074_v10, %v2324_v24 }
 0x296   :  { %v1067_v16 = vcombine.high %v1065_v8, %v1065_v8 }
 0x297   :  { %v1107_v17 = vrot.slane %v1088_v12, %v2324_v24  ;;  %v1098_v20 = vcombine.high %v1088_v12, %v1088_v12  ;;  %v1111_v25 = vrot.slane %v1096_v13, %v2324_v24  ;;  %v1119_v26 = vrot.slane %v1081_v11, %v2324_v24 }
 0x298   :  { %v1140_v27 = vadd.f32 %v1103_v14, %v1042_v15  ;;  %v1095_v33 = vrot.slane %v1067_v16, %v1057_v1  ;;  %v1097_v37 = vcombine.high %v1081_v11, %v1081_v11  ;;  %v2369_v16 = vsub.s32 %v2275_v22, %v2312_v18 }
 0x299   :  { %v1141_v30 = vadd.f32 %v1107_v17, %v1043_v28  ;;  %v1142_v31 = vadd.f32 %v1111_v25, %v1044_v29  ;;  %v1115_v34 = vrot.slane %v1098_v20, %v2324_v24  ;;  %v1144_v35 = vadd.f32 %v1119_v26, %v1046_v32 }
 0x29a   :  { %2109 = vtanh.f32 %v1140_v27  ;;  %v1123_v38 = vrot.slane %v1095_v33, %v2324_v24  ;;  %v1099_v43 = vcombine.high %v1095_v33, %v1095_v33  ;;  %v1127_v44 = vrot.slane %v1097_v37, %v2324_v24 }
 0x29b   :  { %2111 = vtanh.f32 %v1141_v30  ;;  %v1143_v39 = vadd.f32 %v1115_v34, %v1045_v36 }
 0x29c   :  { %2113 = vtanh.f32 %v1142_v31  ;;  %v1145_v45 = vadd.f32 %v1123_v38, %v1047_v41  ;;  %v1131_v52 = vrot.slane %v1099_v43, %v2324_v24  ;;  %v1146_v53 = vadd.f32 %v1127_v44, %v1048_v49 }
 0x29d   :  { %2115 = vtanh.f32 %v1144_v35  ;;  %v1275_v43 = vsub.s32 6, %v2312_v18 }
 0x29e   :  { %2117 = vtanh.f32 %v1143_v39  ;;  %v1147_v59 = vadd.f32 %v1131_v52, %v1049_v58 }
 0x29f   :  { %2119 = vtanh.f32 %v1145_v45 }
 0x2a0   :  { %2121 = vtanh.f32 %v1146_v53 }
 0x2a1   :  { %2123 = vtanh.f32 %v1147_v59  ;;  %v1279_v59 = vsub.s32 7, %v2312_v18 }
 0x2a4   :  { %v2110_v42 = vpop.eup %2109 }
 0x2a5   :  { %v1157_v46 = vmul.f32 %v2110_v42, %v1156_v40  ;;  %v2112_v47 = vpop.eup %2111  ;;  %v1267_v42 = vsub.s32 4, %v2312_v18 }
 0x2a6   :  { %v2114_v48 = vpop.eup %2113  ;;  %v1158_v51 = vmul.f32 %v2112_v47, %v1156_v40 }
 0x2a7   :  { %v1165_v50 = vsel %vm78_vm0, %v1157_v46, 0.0  ;;  %v1159_v56 = vmul.f32 %v2114_v48, %v1156_v40  ;;  %v2116_v57 = vpop.eup %2115  ;;  %v1271_v48 = vsub.s32 5, %v2312_v18  ;;  %v2097_v18 = vld [vmem:[%s2520_s5 + $0x10] ss:$20 sps:$4 sm:$0xff]  }
 0x2a8   :  { %1166 = vadd.xlane.f32.xlu0 %v1165_v50  ;;  %v1168_v54 = vsel %vm78_vm0, %v1158_v51, 0.0  ;;  %v1161_v61 = vmul.f32 %v2116_v57, %v1156_v40  ;;  %v2118_v63 = vpop.eup %2117 }
 0x2a9   :  { %1169 = vadd.xlane.f32.xlu1 %v1168_v54  ;;  %v1171_v60 = vsel %vm78_vm0, %v1159_v56, 0.0  ;;  %v1160_v1 = vmul.f32 %v2118_v63, %v1156_v40  ;;  %v2120_v2 = vpop.eup %2119 }
 0x2aa   :  { %v1177_v55 = vsel %vm78_vm0, %v1161_v61, 0.0  ;;  %v1162_v4 = vmul.f32 %v2120_v2, %v1156_v40  ;;  %v2122_v5 = vpop.eup %2121 }
 0x2ab   :  { %v1174_v0 = vsel %vm78_vm0, %v1160_v1, 0.0  ;;  %v1163_v7 = vmul.f32 %v2122_v5, %v1156_v40  ;;  %v2124_v8 = vpop.eup %2123 }
 0x2ac   :  { %v1180_v6 = vsel %vm78_vm0, %v1162_v4, 0.0  ;;  %v1164_v10 = vmul.f32 %v2124_v8, %v1156_v40 }
 0x2ad   :  { %1172 = vadd.xlane.f32.xlu1 %v1171_v60  ;;  %v1183_v9 = vsel %vm78_vm0, %v1163_v7, 0.0 }
 0x2ae   :  { %v1186_v11 = vsel %vm78_vm0, %v1164_v10, 0.0 }
 0x2b1   :  { %1178 = vadd.xlane.f32.xlu1 %v1177_v55 }
 0x2b5   :  { %1175 = vadd.xlane.f32.xlu1 %v1174_v0 }
 0x2b9   :  { %1181 = vadd.xlane.f32.xlu1 %v1180_v6 }
 0x2bd   :  { %1184 = vadd.xlane.f32.xlu1 %v1183_v9 }
 0x2c1   :  { %1187 = vadd.xlane.f32.xlu1 %v1186_v11 }
 0x335   :  { %v1167_v17 = vpop.xlane.xlu0 %1166 }
 0x336   :  { %v1170_v12 = vpop.xlane.xlu1 %1169  ;;  %v1200_v27 = vrot.slane %v1167_v17, %v2369_v16 }
 0x337   :  { %v1204_v20 = vrot.slane %v1170_v12, %v2369_v16 }
 0x339   :  { %v1230_v29 = vsel %vm1229_vm3, %v1204_v20, %v1200_v27 }
 0x33a   :  { %v1173_v13 = vpop.xlane.xlu1 %1172 }
 0x33b   :  { %v1208_v25 = vrot.slane %v1173_v13, %v2369_v16 }
 0x33d   :  { %v1232_v30 = vsel %vm1231_vm4, %v1208_v25, %v1230_v29 }
 0x33e   :  { %v1179_v14 = vpop.xlane.xlu1 %1178 }
 0x33f   :  { %v1216_v33 = vrot.slane %v1179_v14, %v2369_v16 }
 0x342   :  { %v1176_v15 = vpop.xlane.xlu1 %1175 }
 0x343   :  { %v1212_v28 = vrot.slane %v1176_v15, %v2369_v16 }
 0x345   :  { %v1234_v22 = vsel %vm1233_vm5, %v1212_v28, %v1232_v30 }
 0x346   :  { %v1182_v26 = vpop.xlane.xlu1 %1181  ;;  %v1236_v36 = vsel %vm1235_vm6, %v1216_v33, %v1234_v22 }
 0x347   :  { %v1220_v32 = vrot.slane %v1182_v26, %v2369_v16 }
 0x349   :  { %v1238_v38 = vsel %vm1237_vm7, %v1220_v32, %v1236_v36 }
 0x34a   :  { %v1185_v31 = vpop.xlane.xlu1 %1184 }
 0x34b   :  { %v1224_v34 = vrot.slane %v1185_v31, %v2369_v16 }
 0x34d   :  { %v1240_v39 = vsel %vm1239_vm8, %v1224_v34, %v1238_v38 }
 0x34e   :  { %v1188_v35 = vpop.xlane.xlu1 %1187 }
 0x34f   :  { %v1228_v37 = vrot.slane %v1188_v35, %v2369_v16 }
 0x351   :  { %v1242_v40 = vsel %vm1241_vm9, %v1228_v37, %v1240_v39 }
 0x352   :  { %v1245_v41 = vsel %vm1244_vm10, %v1242_v40, -inf }
 0x353   :  { %1246 = vmax.xlane.f32.xlu1 %v1245_v41 }
 0x3e0   :  { %v1247_v44 = vpop.xlane.xlu1 %1246 }
 0x3e1   :  { %v1252_v45 = vrot.slane %v1247_v44, %v2324_v24  ;;  %v1256_v46 = vrot.slane %v1247_v44, %v2329_v21  ;;  %v1260_v47 = vrot.slane %v1247_v44, %v2315_v19  ;;  %v1268_v49 = vrot.slane %v1247_v44, %v1267_v42 }
 0x3e2   :  { %v1264_v50 = vrot.slane %v1247_v44, %v2321_v23  ;;  %v1276_v54 = vrot.slane %v1247_v44, %v1275_v43  ;;  %v1272_v60 = vrot.slane %v1247_v44, %v1271_v48  ;;  %v1280_v2 = vrot.slane %v1247_v44, %v1279_v59 }
 0x3e3   :  { %v1289_v51 = vsub.f32 %v1167_v17, %v1252_v45  ;;  %v1290_v52 = vsub.f32 %v1170_v12, %v1256_v46  ;;  %v1291_v53 = vsub.f32 %v1173_v13, %v1260_v47  ;;  %v1293_v56 = vsub.f32 %v1179_v14, %v1268_v49 }
 0x3e4   :  { %v1292_v61 = vsub.f32 %v1176_v15, %v1264_v50  ;;  %v1295_v55 = vsub.f32 %v1185_v31, %v1276_v54  ;;  %v1294_v0 = vsub.f32 %v1182_v26, %v1272_v60  ;;  %v1296_v6 = vsub.f32 %v1188_v35, %v1280_v2 }
 0x3e5   :  { %v1297_v57 = vmul.f32 1.442695, %v1289_v51  ;;  %v1299_v58 = vmul.f32 1.442695, %v1290_v52  ;;  %v1301_v63 = vmul.f32 1.442695, %v1291_v53 }
 0x3e6   :  { %v1305_v1 = vmul.f32 1.442695, %v1293_v56  ;;  %v1303_v4 = vmul.f32 1.442695, %v1292_v61  ;;  %v1309_v5 = vmul.f32 1.442695, %v1295_v55 }
 0x3e7   :  { %2125 = vpow2.f32 %v1297_v57  ;;  %v1307_v7 = vmul.f32 1.442695, %v1294_v0  ;;  %v1311_v10 = vmul.f32 1.442695, %v1296_v6 }
 0x3e8   :  { %2127 = vpow2.f32 %v1299_v58 }
 0x3e9   :  { %2129 = vpow2.f32 %v1301_v63 }
 0x3ea   :  { %2131 = vpow2.f32 %v1305_v1 }
 0x3eb   :  { %2133 = vpow2.f32 %v1303_v4  ;;  %v2178_v4 = vmov 0.0  }
 0x3ec   :  { %2135 = vpow2.f32 %v1309_v5  ;;  %1911 = vmatprep.subr.bf16.mxu0 %v2178_v4  ;;  %1915 = vmatprep.mubr.msk.bf16.mxu0 %vm2179_vm11, %v2178_v4  ;;  %v1439_v5 = vld [vmem:[%s2516_s1 + $0x8] sm:$0xff] }
 0x3ed   :  { %2137 = vpow2.f32 %v1307_v7  ;;  %1919 = vmatprep.subr.bf16.mxu1 %v2178_v4  ;;  %1923 = vmatprep.mubr.msk.bf16.mxu1 %vm2179_vm11, %v2178_v4 }
 0x3ee   :  { %2139 = vpow2.f32 %v1311_v10  ;;  %1920 = vmatpush3.bf16.msra.mxu1 %v2097_v18  ;;  %v1445_v18 = vld [vmem:[%s2516_s1 + $0x38] sm:$0xff] }
 0x3ef   :  { %1921 = vmatprep.subr.bf16.mxu1 %v2178_v4 }
 0x3f1   :  { %v2126_v8 = vpop.eup %2125 }
 0x3f2   :  { %v2128_v9 = vpop.eup %2127  ;;  %1322 = vperm.xlu1 %1942, %v2126_v8  }
 0x3f3   :  { %1325 = vperm.xlu0 %1941, %v2128_v9   ;;  %v2130_v11 = vpop.eup %2129 }
 0x3f4   :  { %v2132_v12 = vpop.eup %2131 }
 0x3f5   :  { %v2134_v13 = vpop.eup %2133 }
 0x3f6   :  { %1328 = vperm.xlu1 %1942, %v2130_v11   ;;  %v2136_v14 = vpop.eup %2135 }
 0x3f7   :  { %1334 = vperm.xlu0 %1941, %v2132_v12   ;;  %v2138_v15 = vpop.eup %2137 }
 0x3f8   :  { %v2140_v17 = vpop.eup %2139 }
 0x3fa   :  { %1331 = vperm.xlu1 %1942, %v2134_v13  }
 0x3fb   :  { %1340 = vperm.xlu0 %1941, %v2136_v14  }
 0x3fe   :  { %1337 = vperm.xlu1 %1942, %v2138_v15  }
 0x402   :  { %1343 = vperm.xlu1 %1942, %v2140_v17  }
 0x471   :  { %v1323_v20 = vpop.permute.xlu1 %1322 }
 0x472   :  { %v1326_v25 = vpop.permute.xlu0 %1325  ;;  %v1348_v28 = vrot.slane %v1323_v20, %v2369_v16 }
 0x473   :  { %v1352_v27 = vrot.slane %v1326_v25, %v2369_v16 }
 0x475   :  { %v1329_v26 = vpop.permute.xlu1 %1328  ;;  %v1377_v22 = vsel %vm1229_vm3, %v1352_v27, %v1348_v28 }
 0x476   :  { %v1356_v29 = vrot.slane %v1329_v26, %v2369_v16  ;;  %v1335_v30 = vpop.permute.xlu0 %1334 }
 0x477   :  { %v1364_v35 = vrot.slane %v1335_v30, %v2369_v16 }
 0x478   :  { %v1378_v33 = vsel %vm1231_vm4, %v1356_v29, %v1377_v22 }
 0x479   :  { %v1332_v31 = vpop.permute.xlu1 %1331 }
 0x47a   :  { %v1360_v32 = vrot.slane %v1332_v31, %v2369_v16  ;;  %v1341_v37 = vpop.permute.xlu0 %1340 }
 0x47b   :  { %v1372_v41 = vrot.slane %v1341_v37, %v2369_v16  ;;  %v1443_v37 = vld [vmem:[%s2516_s1 + $0x28] sm:$0xff] }
 0x47c   :  { %v1379_v34 = vsel %vm1233_vm5, %v1360_v32, %v1378_v33  ;;  %v2147_v33 = vld [vmem:[%s2516_s1 + $0x20] sm:$0xff] }
 0x47d   :  { %v1338_v36 = vpop.permute.xlu1 %1337  ;;  %v1380_v39 = vsel %vm1235_vm6, %v1364_v35, %v1379_v34 }
 0x47e   :  { %v1368_v38 = vrot.slane %v1338_v36, %v2369_v16 }
 0x480   :  { %v1381_v40 = vsel %vm1237_vm7, %v1368_v38, %v1380_v39 }
 0x481   :  { %v1344_v44 = vpop.permute.xlu1 %1343  ;;  %v1382_v46 = vsel %vm1239_vm8, %v1372_v41, %v1381_v40 }
 0x482   :  { %v1376_v45 = vrot.slane %v1344_v44, %v2369_v16 }
 0x484   :  { %v1383_v47 = vsel %vm1241_vm9, %v1376_v45, %v1382_v46 }
 0x485   :  { %v1385_v49 = vsel %vm1244_vm10, %v1383_v47, 0.0 }
 0x486   :  { %1386 = vadd.xlane.f32.xlu0 %v1385_v49 }
 0x513   :  { %v1387_v50 = vpop.xlane.xlu0 %1386 }
 0x514   :  { %2141 = vrcp.f32 %v1387_v50 }
 0x51e   :  { %v2142_v51 = vpop.eup %2141 }
 0x51f   :  { %v1393_v52 = vrot.slane %v2142_v51, %v2324_v24  ;;  %v1397_v54 = vrot.slane %v2142_v51, %v2329_v21  ;;  %v1401_v57 = vrot.slane %v2142_v51, %v2315_v19  ;;  %v1405_v60 = vrot.slane %v2142_v51, %v2321_v23 }
 0x520   :  { %v1409_v63 = vrot.slane %v2142_v51, %v1267_v42  ;;  %v1413_v24 = vrot.slane %v2142_v51, %v1271_v48  ;;  %v1417_v2 = vrot.slane %v2142_v51, %v1275_v43  ;;  %v1421_v23 = vrot.slane %v2142_v51, %v1279_v59  ;;  %v2095_v42 = vld [vmem:[%s2520_s5 + $0xc] ss:$20 sps:$4 sm:$0xff]   ;;  %v2096_v43 = vld [vmem:[%s2520_s5 + $0x34] ss:$20 sps:$4 sm:$0xff]  }
 0x521   :  { %v1430_v53 = vmul.f32 %v2126_v8, %v1393_v52  ;;  %v1431_v56 = vmul.f32 %v2128_v9, %v1397_v54  ;;  %v1432_v58 = vmul.f32 %v2130_v11, %v1401_v57  ;;  %v1433_v61 = vmul.f32 %v2134_v13, %v1405_v60  ;;  %1912 = vmatpush3.bf16.msra.mxu0 %v2095_v42  ;;  %v1438_v59 = vld [vmem:[%s2516_s1] sm:$0xff]  ;;  %v1440_v9 = vld [vmem:[%s2516_s1 + $0x10] sm:$0xff] }
 0x522   :  { %v1434_v55 = vmul.f32 %v2132_v12, %v1409_v63  ;;  %v1435_v1 = vmul.f32 %v2138_v15, %v1413_v24  ;;  %v1436_v19 = vmul.f32 %v2136_v14, %v1417_v2  ;;  %v1437_v0 = vmul.f32 %v2140_v17, %v1421_v23  ;;  %1913 = vmatprep.subr.bf16.mxu0 %v2178_v4  ;;  %v1441_v15 = vld [vmem:[%s2516_s1 + $0x18] sm:$0xff]  ;;  %v1444_v54 = vld [vmem:[%s2516_s1 + $0x30] sm:$0xff] }
 0x523   :  { %1448 = vperm.xlu1 %1942, %v1430_v53  }
 0x525   :  { %1914 = vmatpush3.bf16.msra.mxu0 %v2096_v43 }
 0x527   :  { %1453 = vperm.xlu1 %1942, %v1431_v56  }
 0x52b   :  { %1458 = vperm.xlu1 %1942, %v1432_v58  }
 0x52f   :  { %1463 = vperm.xlu1 %1942, %v1433_v61  }
 0x533   :  { %1468 = vperm.xlu1 %1942, %v1434_v55  }
 0x537   :  { %1473 = vperm.xlu1 %1942, %v1435_v1  }
 0x53b   :  { %1478 = vperm.xlu1 %1942, %v1436_v19  }
 0x53f   :  { %1483 = vperm.xlu1 %1942, %v1437_v0  }
 0x5a2   :  { %v1449_v48 = vpop.permute.xlu1 %1448 }
 0x5a3   :  { %v1486_v7 = vmul.f32 %v1449_v48, %v1438_v59  ;;  %v1723_v47 = vrot.slane %v1449_v48, %v2369_v16 }
 0x5a5   :  { %v1494_v12 = vsel %vm78_vm0, %v1486_v7, 0.0 }
 0x5a6   :  { %v1454_v6 = vpop.permute.xlu1 %1453  ;;  %v1495_v20 = vrot.slane %v1494_v12, 4 }
 0x5a7   :  { %v1487_v8 = vmul.f32 %v1454_v6, %v1439_v5  ;;  %v1727_v38 = vrot.slane %v1454_v6, %v2369_v16 }
 0x5a8   :  { %v1496_v31 = vadd.f32 %v1495_v20, %v1494_v12 }
 0x5a9   :  { %v1501_v10 = vsel %vm78_vm0, %v1487_v8, 0.0  ;;  %v1752_v56 = vsel %vm1229_vm3, %v1727_v38, %v1723_v47 }
 0x5aa   :  { %v1459_v11 = vpop.permute.xlu1 %1458  ;;  %v1502_v14 = vrot.slane %v1501_v10, 4  ;;  %v1497_v41 = vrot.slane %v1496_v31, 2 }
 0x5ab   :  { %v1488_v13 = vmul.f32 %v1459_v11, %v1440_v9  ;;  %v1731_v49 = vrot.slane %v1459_v11, %v2369_v16 }
 0x5ac   :  { %v1503_v28 = vadd.f32 %v1502_v14, %v1501_v10  ;;  %v1498_v61 = vadd.f32 %v1497_v41, %v1496_v31 }
 0x5ad   :  { %v1508_v17 = vsel %vm78_vm0, %v1488_v13, 0.0  ;;  %v1753_v2 = vsel %vm1231_vm4, %v1731_v49, %v1752_v56 }
 0x5ae   :  { %v1509_v25 = vrot.slane %v1508_v17, 4  ;;  %v1464_v26 = vpop.permute.xlu1 %1463  ;;  %v1504_v35 = vrot.slane %v1503_v28, 2  ;;  %v1499_v7 = vrot.slane %v1498_v61, 1 }
 0x5af   :  { %v1489_v27 = vmul.f32 %v1464_v26, %v1441_v15  ;;  %v1735_v52 = vrot.slane %v1464_v26, %v2369_v16 }
 0x5b0   :  { %v1510_v29 = vadd.f32 %v1509_v25, %v1508_v17  ;;  %v1505_v51 = vadd.f32 %v1504_v35, %v1503_v28 }
 0x5b1   :  { %v1515_v30 = vsel %vm78_vm0, %v1489_v27, 0.0  ;;  %v1754_v42 = vsel %vm1233_vm5, %v1735_v52, %v1753_v2 }
 0x5b2   :  { %v1516_v22 = vrot.slane %v1515_v30, 4  ;;  %v1469_v32 = vpop.permute.xlu1 %1468  ;;  %v1511_v39 = vrot.slane %v1510_v29, 2  ;;  %v1506_v0 = vrot.slane %v1505_v51, 1 }
 0x5b3   :  { %v1490_v34 = vmul.f32 %v2147_v33, %v1469_v32  ;;  %v1739_v58 = vrot.slane %v1469_v32, %v2369_v16 }
 0x5b4   :  { %v1517_v36 = vadd.f32 %v1516_v22, %v1515_v30  ;;  %v1512_v57 = vadd.f32 %v1511_v39, %v1510_v29  ;;  %v1507_v17 = vadd.f32 %v1506_v0, %v1505_v51  ;;  %v1500_v30 = vadd.f32 %v1499_v7, %v1498_v61 }
 0x5b5   :  { %v1522_v40 = vsel %vm78_vm0, %v1490_v34, 0.0  ;;  %v1755_v59 = vsel %vm1235_vm6, %v1739_v58, %v1754_v42 }
 0x5b6   :  { %v1518_v44 = vrot.slane %v1517_v36, 2  ;;  %v1523_v45 = vrot.slane %v1522_v40, 4  ;;  %v1474_v46 = vpop.permute.xlu1 %1473  ;;  %v1513_v48 = vrot.slane %v1512_v57, 1  ;;  %v1551_v34 = vpack.c.bf16 %v1507_v17, %v1507_v17 }
 0x5b7   :  { %v1491_v50 = vmul.f32 %v1474_v46, %v1443_v37  ;;  %v1743_v24 = vrot.slane %v1474_v46, %v2369_v16  ;;  %v1550_v39 = vpack.c.bf16 %v1500_v30, %v1500_v30 }
 0x5b8   :  { %v1524_v53 = vadd.f32 %v1523_v45, %v1522_v40  ;;  %v1519_v63 = vadd.f32 %v1518_v44, %v1517_v36  ;;  %v1514_v26 = vadd.f32 %v1513_v48, %v1512_v57  ;;  %v1571_v46 = vunpack.c.l.b16 %v1551_v34 }
 0x5b9   :  { %v1529_v60 = vsel %vm78_vm0, %v1491_v50, 0.0  ;;  %v1756_v9 = vsel %vm1237_vm7, %v1743_v24, %v1755_v59  ;;  %v1570_v52 = vunpack.c.l.b16 %v1550_v39 }
 0x5ba   :  { %v1525_v55 = vrot.slane %v1524_v53, 2  ;;  %v1479_v1 = vpop.permute.xlu1 %1478  ;;  %v1530_v19 = vrot.slane %v1529_v60, 4  ;;  %v1520_v8 = vrot.slane %v1519_v63, 1  ;;  %v1552_v37 = vpack.c.bf16 %v1514_v26, %v1514_v26 }
 0x5bb   :  { %v1492_v23 = vmul.f32 %v1479_v1, %v1444_v54  ;;  %v1747_v43 = vrot.slane %v1479_v1, %v2369_v16  ;;  %v1578_v58 = vsel %vm1229_vm3, %v1571_v46, %v1570_v52 }
 0x5bc   :  { %v1526_v4 = vadd.f32 %v1525_v55, %v1524_v53  ;;  %v1531_v5 = vadd.f32 %v1530_v19, %v1529_v60  ;;  %v1521_v31 = vadd.f32 %v1520_v8, %v1519_v63  ;;  %v1572_v51 = vunpack.c.l.b16 %v1552_v37 }
 0x5bd   :  { %v1536_v6 = vsel %vm78_vm0, %v1492_v23, 0.0  ;;  %v1757_v25 = vsel %vm1239_vm8, %v1747_v43, %v1756_v9  ;;  %v2098_v43 = vld [vmem:[%s2520_s5 + $0x38] ss:$20 sps:$4 sm:$0xff]  }
 0x5be   :  { %v1537_v10 = vrot.slane %v1536_v6, 4  ;;  %v1484_v11 = vpop.permute.xlu1 %1483  ;;  %v1527_v12 = vrot.slane %v1526_v4, 1  ;;  %v1532_v13 = vrot.slane %v1531_v5, 2  ;;  %v1553_v40 = vpack.c.bf16 %v1521_v31, %v1521_v31  ;;  %1922 = vmatpush3.bf16.msra.mxu1 %v2098_v43 }
 0x5bf   :  { %v1493_v14 = vmul.f32 %v1484_v11, %v1445_v18  ;;  %v1751_v15 = vrot.slane %v1484_v11, %v2369_v16  ;;  %v1579_v63 = vsel %vm1231_vm4, %v1572_v51, %v1578_v58  ;;  %v974_v18 = vrot.slane %v2341_v62, %v2329_v21  ;;  %v1648_v11 = vld [vmem:[%s2521_s6 + $0x21] ss:$0 sm:$0xff] }
 0x5c0   :  { %v1538_v20 = vadd.f32 %v1537_v10, %v1536_v6  ;;  %v1533_v27 = vadd.f32 %v1532_v13, %v1531_v5  ;;  %v1528_v16 = vadd.f32 %v1527_v12, %v1526_v4  ;;  %v1573_v53 = vunpack.c.l.b16 %v1553_v40 }
 0x5c1   :  { %v1543_v28 = vsel %vm78_vm0, %v1493_v14, 0.0  ;;  %v1758_v29 = vsel %vm1241_vm9, %v1751_v15, %v1757_v25  ;;  %v1038_v48 = vadd.f32 %v2346_v3, %v974_v18 }
 0x5c2   :  { %v1539_v22 = vrot.slane %v1538_v20, 2  ;;  %v1544_v32 = vrot.slane %v1543_v28, 4  ;;  %1760 = vst.msk [vmem:[%s2522_s7 + $0x18] sm:$0xff] %vm1244_vm10, %v1758_v29  ;;  %v1534_v33 = vrot.slane %v1533_v27, 1  ;;  %v1554_v45 = vpack.c.bf16 %v1528_v16, %v1528_v16 }
 0x5c3   :  { %v1580_v24 = vsel %vm1233_vm5, %v1573_v53, %v1579_v63 }
 0x5c4   :  { %v1540_v35 = vadd.f32 %v1539_v22, %v1538_v20  ;;  %v1545_v36 = vadd.f32 %v1544_v32, %v1543_v28  ;;  %v1535_v38 = vadd.f32 %v1534_v33, %v1533_v27  ;;  %v1574_v57 = vunpack.c.l.b16 %v1554_v45 }
 0x5c6   :  { %v1541_v41 = vrot.slane %v1540_v35, 1  ;;  %v1546_v44 = vrot.slane %v1545_v36, 2  ;;  %v1555_v47 = vpack.c.bf16 %v1535_v38, %v1535_v38  ;;  %v1581_v2 = vsel %vm1235_vm6, %v1574_v57, %v1580_v24 }
 0x5c8   :  { %v1542_v49 = vadd.f32 %v1541_v41, %v1540_v35  ;;  %v1547_v50 = vadd.f32 %v1546_v44, %v1545_v36  ;;  %v1575_v60 = vunpack.c.l.b16 %v1555_v47 }
 0x5ca   :  { %v1556_v54 = vpack.c.bf16 %v1542_v49, %v1542_v49  ;;  %v1548_v56 = vrot.slane %v1547_v50, 1  ;;  %v1582_v19 = vsel %vm1237_vm7, %v1575_v60, %v1581_v2 }
 0x5cc   :  { %v1549_v61 = vadd.f32 %v1548_v56, %v1547_v50  ;;  %v1576_v55 = vunpack.c.l.b16 %v1556_v54 }
 0x5ce   :  { %v1557_v1 = vpack.c.bf16 %v1549_v61, %v1549_v61  ;;  %v1583_v0 = vsel %vm1239_vm8, %v1576_v55, %v1582_v19 }
 0x5d0   :  { %v1577_v23 = vunpack.c.l.b16 %v1557_v1 }
 0x5d2   :  { %v1584_v42 = vsel %vm1241_vm9, %v1577_v23, %v1583_v0 }
 0x5d3   :  { %v1585_v4 = vpack.c.b16 %v1584_v42, %v1584_v42 }
 0x5d5   :  { %1916 = vmatmul.mubr.msk.bf16.vlgmr.msra.gmra.mrb[16].mxu0 %vm78_vm0, %v1585_v4 }
 0x6a8   :  { %v1635_v59 = vpop.f32.mrb[16].mxu0 }
 0x6a9   :  { %v1641_v5 = vadd.f32 %v1635_v59, %v1038_v48  ;;  %v1917_v6 = vpop.f32.mrb[17].mxu0 }
 0x6aa   :  { %v1638_v7 = vpop.f32.mrb[18].mxu0 }
 0x6ab   :  { %v1642_v8 = vmax.f32 %v1641_v5, 0.0  ;;  %v1918_v9 = vpop.f32.mrb[19].mxu0 }
 0x6ad   :  { %v1643_v10 = vpack.c.bf16 %v1642_v8, %v1642_v8  ;;  %1719 = vst [vmem:[%s2522_s7 + $0x10] sm:$0xff] %v1642_v8 }
 0x6af   :  { %1924 = vmatmul.mubr.msk.bf16.vlgmr.msra.gmra.mrb[8].mxu1 %vm78_vm0, %v1643_v10 }
 0x782   :  { %v1698_v21 = vpop.f32.mrb[8].mxu1 }
 0x783   :  { %v1699_v62 = vadd.f32 %v1698_v21, %v1648_v11  ;;  %v1925_v3 = vpop.f32.mrb[9].mxu1 }
 0x784   :  { %v1701_v12 = vpop.f32.mrb[10].mxu1 }
 0x785   :  { %1704 = vmax.xlane.f32.xlu0 %v1699_v62  ;;  %v1926_v13 = vpop.f32.mrb[11].mxu1 }
 0x812   :  { %v1705_v14 = vpop.xlane.xlu0 %1704 }
 0x813   :  { %v1706_v15 = vsub.f32 %v1699_v62, %v1705_v14 }
 0x815   :  { %v1707_v17 = vmul.f32 1.442695, %v1706_v15 }
 0x817   :  { %2143 = vpow2.f32 %v1707_v17 }
 0x821   :  { %v2144_v20 = vpop.eup %2143 }
 0x822   :  { %1709 = vadd.xlane.f32.xlu1 %v2144_v20 }
 0x8af   :  { %v1710_v25 = vpop.xlane.xlu1 %1709 }
 0x8b0   :  { %2145 = vlog2.f32 %v1710_v25 }
 0x8ba   :  { %v2146_v26 = vpop.eup %2145 }
 0x8bb   :  { %v1712_v27 = vmul.f32 0.6931472, %v2146_v26 }
 0x8bd   :  { %v1713_v28 = vadd.f32 %v1712_v27, %v1705_v14 }
 0x8bf   :  { %v1714_v29 = vsub.f32 %v1699_v62, %v1713_v28 }
 0x8c1   :  { %1717 = vst [vmem:[%s2522_s7] sm:$0xff] %v1714_v29 }
 0x8c2   :  { %1765 = vsyncpa [#allocation6], 1 }

</bundles_post_ra>
